<compile_context>
chip_gen: v7x
topology: tpu7x:2x2x1
jax: 0.10.0
libtpu: 0.0.40
codegen_flags: <defaults>
</compile_context>

<pallas_src>
import math

import jax
import jax.numpy as jnp
from jax import lax
from jax.experimental import pallas as pl
from jax.experimental.pallas import tpu as pltpu


def _round_up(a, b):
    return ((a + b - 1) // b) * b


def sfa_packed_kernel(xp_ref, wbd_ref, selres_ref, selt2_ref, out_ref):
    xp = xp_ref[...]                     # [TP, P*D]  dense, 128-lane aligned
    wbd = wbd_ref[...]                   # [P*D, P*K] block-diag W^T (resident)

    # score (packed): each P*K-column group j holds x_row(Pp+j) @ W^T.
    score = jnp.dot(xp, wbd, preferred_element_type=jnp.float32)        # [TP, P*K]

    # rec (packed) = score @ W_bd^T without materializing the transpose.
    rec = lax.dot_general(
        score, wbd,
        dimension_numbers=(((1,), (1,)), ((), ())),
        preferred_element_type=jnp.float32,
    )                                                                    # [TP, P*D]

    diff = xp - rec

    # Fused per-original-row reductions via tiny resident selector matrices:
    #   cols [0,P)  : mean over D of diff^2        (res)
    #   cols [P,2P) : sum  over K of score^2       (t2)
    out_ref[...] = (
        jnp.dot(diff * diff, selres_ref[...], preferred_element_type=jnp.float32)
        + jnp.dot(score * score, selt2_ref[...], preferred_element_type=jnp.float32)
    )                                                                    # [TP, 2P]


def sfa_forward(x, w, *, block_rows=8192):
    """x: [N, D] float32, w: [K, D] float32 -> (res [N], t2 [N])."""
    x = jnp.asarray(x, jnp.float32)
    w = jnp.asarray(w, jnp.float32)
    N, D = x.shape
    K, D2 = w.shape
    assert D == D2, "weight / input feature-dim mismatch"
    assert K >= 1

    # Rows packed per super-row so that the packed lane width P*D is a multiple
    # of 128 (fully dense vregs / DMA rows).  D=40 -> P=16, P*D=640, P*K=128.
    P = 128 // math.gcd(D, 128)

    # Pad N up to a multiple of P (zero rows -> zero outputs, sliced off below).
    N_pad = _round_up(max(N, P), P)
    if N_pad != N:
        x = jnp.pad(x, ((0, N_pad - N), (0, 0)))
    R = N_pad // P                              # packed rows
    xp = x.reshape(R, P * D)                    # free row-major view

    # Small constant matrices (built once, resident in VMEM across the grid).
    eye_p = jnp.eye(P, dtype=jnp.float32)
    w_bd = jnp.kron(eye_p, w.T)                                          # [P*D, P*K]
    s_res = jnp.kron(eye_p, jnp.ones((D, 1), jnp.float32) / jnp.float32(D))  # [P*D, P]
    s_t2 = jnp.kron(eye_p, jnp.ones((K, 1), jnp.float32))                # [P*K, P]
    sel_res = jnp.concatenate([s_res, jnp.zeros_like(s_res)], axis=1)    # [P*D, 2P]
    sel_t2 = jnp.concatenate([jnp.zeros_like(s_t2), s_t2], axis=1)       # [P*K, 2P]

    # Packed-row tile size: big tiles to amortize per-step overhead, multiple of
    # 8 (sublane constraint), and >= 2 grid steps when there is enough work so
    # the parallel grid axis can shard across both TensorCores on v7x.
    max_tp = max(8, block_rows // P)            # 8192 rows -> 512 packed rows
    if R <= 8:
        tp = R                                  # single full-extent block
    else:
        tp = min(max_tp, _round_up(pl.cdiv(R, 2), 8))
    grid = (pl.cdiv(R, tp),)

    out = pl.pallas_call(
        sfa_packed_kernel,
        out_shape=jax.ShapeDtypeStruct((R, 2 * P), jnp.float32),
        grid_spec=pltpu.PrefetchScalarGridSpec(
            num_scalar_prefetch=0,
            grid=grid,
            in_specs=[
                # x_packed: streamed dense tiles, double-buffered DMA.
                pl.BlockSpec((tp, P * D), lambda i: (i, 0),
                             pipeline_mode=pl.Buffered(2)),
                # Block-diagonal weights + selectors: constant block index ->
                # loaded once, resident in VMEM across the whole grid.
                pl.BlockSpec((P * D, P * K), lambda i: (0, 0)),
                pl.BlockSpec((P * D, 2 * P), lambda i: (0, 0)),
                pl.BlockSpec((P * K, 2 * P), lambda i: (0, 0)),
            ],
            out_specs=pl.BlockSpec((tp, 2 * P), lambda i: (i, 0)),
        ),
        compiler_params=pltpu.CompilerParams(
            dimension_semantics=("parallel",),
            vmem_limit_bytes=32 * 1024 * 1024,
        ),
    )(xp, w_bd, sel_res, sel_t2)

    res = out[:, :P].reshape(-1)[:N]
    t2 = out[:, P:].reshape(-1)[:N]
    return res, t2


def reference_forward(x, w):
    """Plain-JAX reference mirroring the PyTorch detect()."""
    score = x @ w.T
    rec = score @ w
    res = jnp.mean((x - rec) ** 2, axis=1)
    t2 = jnp.sum(score ** 2, axis=1)
    return res, t2


# TODO(synk): fit() (PCA whitening + generalized eigen-decomposition) is training-time
# setup, not part of forward(); it is not translated to Pallas.

if __name__ == "__main__":
    # configs: input_dim=40, ratio_sfa=0.2 -> n_components = int(40 * 0.2) = 8
    input_dim = 40
    ratio_sfa = 0.2
    n_components = int(input_dim * ratio_sfa)
    # 2437: not a multiple of 16 -> exercises wrapper zero-padding, a 2-step
    # parallel grid, and a partial trailing block.
    n_samples = 2437

    key = jax.random.PRNGKey(0)
    kx, kw = jax.random.split(key)

    x = jax.random.normal(kx, (n_samples, input_dim), dtype=jnp.float32)
    # Deterministic synthetic SFA projection weights (normally set by fit()).
    w = jax.random.normal(kw, (n_components, input_dim), dtype=jnp.float32) / jnp.sqrt(
        jnp.float32(input_dim)
    )

    res, t2 = jax.jit(sfa_forward)(x, w)
    jax.block_until_ready((res, t2))

    res_ref, t2_ref = reference_forward(x, w)
    assert res.shape == (n_samples,) and t2.shape == (n_samples,)
    assert jnp.allclose(res, res_ref, rtol=1e-4, atol=1e-4), "res mismatch"
    assert jnp.allclose(t2, t2_ref, rtol=1e-4, atol=1e-4), "t2 mismatch"

    print("KERNEL_OK")
</pallas_src>

<mosaic_0001>
module attributes {stable_mosaic.version = 11 : i64} {
  func.func @sfa_packed_kernel(%arg0: i32, %arg1: memref<80x640xf32, #tpu.memory_space<vmem>>, %arg2: memref<640x128xf32, #tpu.memory_space<vmem>>, %arg3: memref<640x32xf32, #tpu.memory_space<vmem>>, %arg4: memref<128x32xf32, #tpu.memory_space<vmem>>, %arg5: memref<80x32xf32, #tpu.memory_space<vmem>>) attributes {dimension_semantics = [#tpu.dimension_semantics<parallel>], iteration_bounds = array<i64: 2>, scalar_prefetch = 0 : i64, scratch_operands = 0 : i64, tpu.core_type = #tpu.core_type<tc>, window_params = [{pipeline_mode = #tpu.pipeline_mode<double_buffered>, transform_indices = @transform_0, window_bounds = array<i64: 80, 640>}, {pipeline_mode = #tpu.pipeline_mode<synchronous>, transform_indices = @transform_1, window_bounds = array<i64: 640, 128>}, {pipeline_mode = #tpu.pipeline_mode<synchronous>, transform_indices = @transform_2, window_bounds = array<i64: 640, 32>}, {pipeline_mode = #tpu.pipeline_mode<synchronous>, transform_indices = @transform_3, window_bounds = array<i64: 128, 32>}, {transform_indices = @transform_4, window_bounds = array<i64: 80, 32>}]} {
    %c0 = arith.constant 0 : index
    %c0_0 = arith.constant 0 : index
    %0 = vector.load %arg1[%c0, %c0_0] : memref<80x640xf32, #tpu.memory_space<vmem>>, vector<80x640xf32>
    %c0_1 = arith.constant 0 : index
    %c0_2 = arith.constant 0 : index
    %1 = vector.load %arg2[%c0_1, %c0_2] : memref<640x128xf32, #tpu.memory_space<vmem>>, vector<640x128xf32>
    %cst = arith.constant dense<0.000000e+00> : vector<80x128xf32>
    %2 = tpu.matmul %0, %1, %cst {dimension_numbers = #tpu.dot_dimension_numbers<[1], [0], [0], [1], [0, 0, 1, 1], [], []>} : vector<80x640xf32>, vector<640x128xf32>, vector<80x128xf32> -> vector<80x128xf32>
    %cst_3 = arith.constant dense<0.000000e+00> : vector<80x640xf32>
    %3 = tpu.matmul %2, %1, %cst_3 {dimension_numbers = #tpu.dot_dimension_numbers<[1], [1], [0], [0], [0, 0, 1, 0], [], []>} : vector<80x128xf32>, vector<640x128xf32>, vector<80x640xf32> -> vector<80x640xf32>
    %4 = arith.subf %0, %3 : vector<80x640xf32>
    %5 = arith.mulf %4, %4 : vector<80x640xf32>
    %c0_4 = arith.constant 0 : index
    %c0_5 = arith.constant 0 : index
    %6 = vector.load %arg3[%c0_4, %c0_5] : memref<640x32xf32, #tpu.memory_space<vmem>>, vector<640x32xf32>
    %cst_6 = arith.constant dense<0.000000e+00> : vector<80x32xf32>
    %7 = tpu.matmul %5, %6, %cst_6 {dimension_numbers = #tpu.dot_dimension_numbers<[1], [0], [0], [1], [0, 0, 1, 1], [], []>} : vector<80x640xf32>, vector<640x32xf32>, vector<80x32xf32> -> vector<80x32xf32>
    %8 = arith.mulf %2, %2 : vector<80x128xf32>
    %c0_7 = arith.constant 0 : index
    %c0_8 = arith.constant 0 : index
    %9 = vector.load %arg4[%c0_7, %c0_8] : memref<128x32xf32, #tpu.memory_space<vmem>>, vector<128x32xf32>
    %cst_9 = arith.constant dense<0.000000e+00> : vector<80x32xf32>
    %10 = tpu.matmul %8, %9, %cst_9 {dimension_numbers = #tpu.dot_dimension_numbers<[1], [0], [0], [1], [0, 0, 1, 1], [], []>} : vector<80x128xf32>, vector<128x32xf32>, vector<80x32xf32> -> vector<80x32xf32>
    %11 = arith.addf %7, %10 : vector<80x32xf32>
    %c0_10 = arith.constant 0 : index
    %c0_11 = arith.constant 0 : index
    %12 = vector.load %arg5[%c0_10, %c0_11] : memref<80x32xf32, #tpu.memory_space<vmem>>, vector<80x32xf32>
    tpu.vector_store %arg5[%c0_10, %c0_11], %11 {strides = array<i32>} : memref<80x32xf32, #tpu.memory_space<vmem>>, vector<80x32xf32>,
    return
  }
  func.func @transform_0(%arg0: i32) -> (i32, i32) {
    %c0_i32 = arith.constant 0 : i32
    %c0_i32_0 = arith.constant 0 : i32
    return %arg0, %c0_i32 : i32, i32
  }
  func.func @transform_1(%arg0: i32) -> (i32, i32) {
    %c0_i32 = arith.constant 0 : i32
    %c0_i32_0 = arith.constant 0 : i32
    %c0_i32_1 = arith.constant 0 : i32
    return %c0_i32, %c0_i32_0 : i32, i32
  }
  func.func @transform_2(%arg0: i32) -> (i32, i32) {
    %c0_i32 = arith.constant 0 : i32
    %c0_i32_0 = arith.constant 0 : i32
    %c0_i32_1 = arith.constant 0 : i32
    return %c0_i32, %c0_i32_0 : i32, i32
  }
  func.func @transform_3(%arg0: i32) -> (i32, i32) {
    %c0_i32 = arith.constant 0 : i32
    %c0_i32_0 = arith.constant 0 : i32
    %c0_i32_1 = arith.constant 0 : i32
    return %c0_i32, %c0_i32_0 : i32, i32
  }
  func.func @transform_4(%arg0: i32) -> (i32, i32) {
    %c0_i32 = arith.constant 0 : i32
    %c0_i32_0 = arith.constant 0 : i32
    return %arg0, %c0_i32 : i32, i32
  }
}

</mosaic_0001>

<bundles_post_ra>
// kernel: sfa_forward.1
= control target key start
LH: loop header
LB: loop body
LE: loop exit
PB: predicated region body
PF: predicated region fallthrough
CT: control target
= control target key end

     0   :  { %s2872_s15 = smov 0   ;;  %s3863_s0 = inlined_call_operand.vmem [shape: f32[153,640], index: 0, kind: input, shape index: {}]   ;;  %s3864_s1 = inlined_call_operand.vmem [shape: f32[640,128], index: 1, kind: input, shape index: {}]   ;;  %s3865_s2 = inlined_call_operand.vmem [shape: f32[640,32], index: 2, kind: input, shape index: {}]   ;;  %s3866_s3 = inlined_call_operand.vmem [shape: f32[128,32], index: 3, kind: input, shape index: {}]   ;;  %s3867_s4 = inlined_call_operand.vmem [shape: f32[153,32], index: 4, kind: output, shape index: {}]  }
   0x1 LB: > { %s1777_s16 = sadd.s32 4294967295, %s2845_s15   ;;  %p1781_p0 = scmp.ge.s32.totalorder %s2845_s15, 1  ;;  %s2845_s15 = sphi %s2872_s15, %s14_s15  }
   0x2   : > { %p164_p1 = scmp.lt.s32.totalorder %s2845_s15, 3 }
   0x4   : > { %p165_p2 = pnand %p1781_p0, %p164_p1 }
   0x5   : > { %v270_v0 = vld [vmem:[%s3864_s1 + $0x80] sm:$0xff] (!%p165_p2)  ;;  %v271_v1 = vld [vmem:[%s3864_s1 + $0x88] sm:$0xff] (!%p165_p2)  ;;  %v272_v11 = vld [vmem:[%s3864_s1 + $0x90] sm:$0xff] (!%p165_p2)  ;;  %s2913_s9 = smul.u32 (!%p165_p2), 10, %s1777_s16  ;;  %vm1710_vm0 = vcmask (!%p165_p2), 261120  }
   0x6   : > { %168 = sbr.rel (%p165_p2) target bundleno = 811 (0x32b), region = 36  ;;  %v302_v2 = vld [vmem:[%s3864_s1 + $0x180] sm:$0xff] (!%p165_p2)  ;;  %v2889_v3 = vpack.c.bf16 (!%p165_p2), %v271_v1, %v270_v0  ;;  %v303_v4 = vld [vmem:[%s3864_s1 + $0x188] sm:$0xff] (!%p165_p2)  ;;  %v273_v13 = vld [vmem:[%s3864_s1 + $0x98] sm:$0xff] (!%p165_p2) }
   0x7   : > { %v254_v5 = vld [vmem:[%s3864_s1] sm:$0xff] (!%p165_p2)  ;;  %v255_v6 = vld [vmem:[%s3864_s1 + $0x8] sm:$0xff] (!%p165_p2)  ;;  %v2900_v7 = vpack.c.bf16 (!%p165_p2), %v303_v4, %v302_v2  ;;  %v304_v14 = vld [vmem:[%s3864_s1 + $0x190] sm:$0xff] (!%p165_p2)  ;;  %v2929_v16 = vpack.c.bf16 (!%p165_p2), %v273_v13, %v272_v11  ;;  %p192_p3 = scmp.lt.s32.totalorder (!%p165_p2), %s2913_s9, 19 }
   0x8   : > { %v2902_v8 = vpack.c.bf16 (!%p165_p2), %v255_v6, %v254_v5  ;;  %v286_v9 = vld [vmem:[%s3864_s1 + $0x100] sm:$0xff] (!%p165_p2)  ;;  %v287_v10 = vld [vmem:[%s3864_s1 + $0x108] sm:$0xff] (!%p165_p2)  ;;  %2431 = vmatprep.subr.bf16.mxu0 (!%p165_p2), %v2889_v3  ;;  %v305_v15 = vld [vmem:[%s3864_s1 + $0x198] sm:$0xff] (!%p165_p2) }
   0x9   : > { %v2916_v12 = vpack.c.bf16 (!%p165_p2), %v287_v10, %v286_v9  ;;  %2463 = vmatprep.subr.bf16.mxu1 (!%p165_p2), %v2900_v7  ;;  %v2931_v17 = vpack.c.bf16 (!%p165_p2), %v305_v15, %v304_v14  ;;  %v256_v18 = vld [vmem:[%s3864_s1 + $0x10] sm:$0xff] (!%p165_p2)  ;;  %v257_v19 = vld [vmem:[%s3864_s1 + $0x18] sm:$0xff] (!%p165_p2)  ;;  %v274_v23 = vld [vmem:[%s3864_s1 + $0xa0] sm:$0xff] (!%p165_p2) }
   0xa   : > { %2433 = vmatpush3.bf16.msra.mxu0 (!%p165_p2), %v2902_v8  ;;  %v288_v20 = vld [vmem:[%s3864_s1 + $0x110] sm:$0xff] (!%p165_p2)  ;;  %v2943_v21 = vpack.c.bf16 (!%p165_p2), %v257_v19, %v256_v18  ;;  %v289_v22 = vld [vmem:[%s3864_s1 + $0x118] sm:$0xff] (!%p165_p2)  ;;  %v275_v24 = vld [vmem:[%s3864_s1 + $0xa8] sm:$0xff] (!%p165_p2) }
   0xb   : > { %2465 = vmatpush3.bf16.msra.mxu1 (!%p165_p2), %v2916_v12  ;;  %2435 = vmatprep.subr.bf16.mxu0 (!%p165_p2), %v2929_v16  ;;  %v2956_v25 = vpack.c.bf16 (!%p165_p2), %v289_v22, %v288_v20  ;;  %v2958_v26 = vpack.c.bf16 (!%p165_p2), %v275_v24, %v274_v23  ;;  %v306_v27 = vld [vmem:[%s3864_s1 + $0x1a0] sm:$0xff] (!%p165_p2)  ;;  %v307_v28 = vld [vmem:[%s3864_s1 + $0x1a8] sm:$0xff] (!%p165_p2)  ;;  %v276_v35 = vld [vmem:[%s3864_s1 + $0xb0] sm:$0xff] (!%p165_p2) }
   0xc   : > { %2467 = vmatprep.subr.bf16.mxu1 (!%p165_p2), %v2931_v17  ;;  %v258_v29 = vld [vmem:[%s3864_s1 + $0x20] sm:$0xff] (!%p165_p2)  ;;  %v2970_v30 = vpack.c.bf16 (!%p165_p2), %v307_v28, %v306_v27  ;;  %v259_v31 = vld [vmem:[%s3864_s1 + $0x28] sm:$0xff] (!%p165_p2)  ;;  %v277_v36 = vld [vmem:[%s3864_s1 + $0xb8] sm:$0xff] (!%p165_p2) }
   0xd   : > { %v290_v32 = vld [vmem:[%s3864_s1 + $0x120] sm:$0xff]  ;;  %v291_v33 = vld [vmem:[%s3864_s1 + $0x128] sm:$0xff]  ;;  %v2982_v34 = vpack.c.bf16 %v259_v31, %v258_v29  ;;  %v308_v37 = vld [vmem:[%s3864_s1 + $0x1b0] sm:$0xff]  ;;  %v2997_v39 = vpack.c.bf16 %v277_v36, %v276_v35  ;;  %s3869_s9 = smov (!%p192_p3, %s2913_s9), 19 }
   0xe   : > { %2437 = vmatpush3.bf16.msra.mxu0 %v2943_v21  ;;  %v2995_v38 = vpack.c.bf16 %v291_v33, %v290_v32  ;;  %v309_v40 = vld [vmem:[%s3864_s1 + $0x1b8] sm:$0xff]  ;;  %v260_v41 = vld [vmem:[%s3864_s1 + $0x30] sm:$0xff]  ;;  %v278_v46 = vld [vmem:[%s3864_s1 + $0xc0] sm:$0xff]  ;;  %s2780_s29 = smul.u32 40, %s3869_s9 }
   0xf   : > { %2469 = vmatpush3.bf16.msra.mxu1 %v2956_v25  ;;  %2439 = vmatprep.subr.bf16.mxu0 %v2958_v26  ;;  %v261_v42 = vld [vmem:[%s3864_s1 + $0x38] sm:$0xff]  ;;  %v3009_v43 = vpack.c.bf16 %v309_v40, %v308_v37  ;;  %v292_v44 = vld [vmem:[%s3864_s1 + $0x130] sm:$0xff]  ;;  %v279_v47 = vld [vmem:[%s3864_s1 + $0xc8] sm:$0xff] }
  0x10   : > { %2471 = vmatprep.subr.bf16.mxu1 %v2970_v30  ;;  %v293_v45 = vld [vmem:[%s3864_s1 + $0x138] sm:$0xff]  ;;  %v310_v48 = vld [vmem:[%s3864_s1 + $0x1c0] sm:$0xff]  ;;  %v311_v49 = vld [vmem:[%s3864_s1 + $0x1c8] sm:$0xff]  ;;  %v3035_v50 = vpack.c.bf16 %v261_v42, %v260_v41  ;;  %v3041_v52 = vpack.c.bf16 %v279_v47, %v278_v46  ;;  %s3104_s24 = scalar_lea.vmem %s3863_s0, %s2780_s29 }
  0x11   : > { %v3039_v51 = vpack.c.bf16 %v293_v45, %v292_v44  ;;  %v262_v53 = vld [vmem:[%s3864_s1 + $0x40] sm:$0xff]  ;;  %v263_v54 = vld [vmem:[%s3864_s1 + $0x48] sm:$0xff]  ;;  %v3053_v56 = vpack.c.bf16 %v311_v49, %v310_v48  ;;  %v280_v58 = vld [vmem:[%s3864_s1 + $0xd0] sm:$0xff] }
  0x12   : > { %2441 = vmatpush3.bf16.msra.mxu0 %v2982_v34  ;;  %v294_v55 = vld [vmem:[%s3864_s1 + $0x140] sm:$0xff]  ;;  %v295_v57 = vld [vmem:[%s3864_s1 + $0x148] sm:$0xff]  ;;  %v281_v59 = vld [vmem:[%s3864_s1 + $0xd8] sm:$0xff]  ;;  %v3072_v62 = vpack.c.bf16 %v263_v54, %v262_v53 }
  0x13   : > { %2473 = vmatpush3.bf16.msra.mxu1 %v2995_v38  ;;  %2443 = vmatprep.subr.bf16.mxu0 %v2997_v39  ;;  %v312_v60 = vld [vmem:[%s3864_s1 + $0x1d0] sm:$0xff]  ;;  %v313_v61 = vld [vmem:[%s3864_s1 + $0x1d8] sm:$0xff]  ;;  %v3076_v63 = vpack.c.bf16 %v295_v57, %v294_v55  ;;  %v3078_v0 = vpack.c.bf16 %v281_v59, %v280_v58  ;;  %v282_v9 = vld [vmem:[%s3864_s1 + $0xe0] sm:$0xff] }
  0x14   : > { %2475 = vmatprep.subr.bf16.mxu1 %v3009_v43  ;;  %v264_v1 = vld [vmem:[%s3864_s1 + $0x50] sm:$0xff]  ;;  %v265_v2 = vld [vmem:[%s3864_s1 + $0x58] sm:$0xff]  ;;  %v3090_v5 = vpack.c.bf16 %v313_v61, %v312_v60  ;;  %v283_v10 = vld [vmem:[%s3864_s1 + $0xe8] sm:$0xff] }
  0x15   : > { %v296_v4 = vld [vmem:[%s3864_s1 + $0x150] sm:$0xff]  ;;  %v297_v6 = vld [vmem:[%s3864_s1 + $0x158] sm:$0xff]  ;;  %v314_v11 = vld [vmem:[%s3864_s1 + $0x1e0] sm:$0xff]  ;;  %v3113_v14 = vpack.c.bf16 %v265_v2, %v264_v1  ;;  %v3125_v20 = vpack.c.bf16 %v283_v10, %v282_v9 }
  0x16   : > { %2445 = vmatpush3.bf16.msra.mxu0 %v3035_v50  ;;  %v315_v13 = vld [vmem:[%s3864_s1 + $0x1e8] sm:$0xff]  ;;  %v266_v15 = vld [vmem:[%s3864_s1 + $0x60] sm:$0xff]  ;;  %v3123_v19 = vpack.c.bf16 %v297_v6, %v296_v4  ;;  %v207_v24 = vld [vmem:[%s3104_s24 + $0x18] sm:$0xff] }
  0x17   : > { %2477 = vmatpush3.bf16.msra.mxu1 %v3039_v51  ;;  %2447 = vmatprep.subr.bf16.mxu0 %v3041_v52  ;;  %v267_v18 = vld [vmem:[%s3864_s1 + $0x68] sm:$0xff]  ;;  %v298_v22 = vld [vmem:[%s3864_s1 + $0x160] sm:$0xff]  ;;  %v3133_v27 = vpack.c.bf16 %v315_v13, %v314_v11  ;;  %v284_v29 = vld [vmem:[%s3864_s1 + $0xf0] sm:$0xff] }
  0x18   : > { %2479 = vmatprep.subr.bf16.mxu1 %v3053_v56  ;;  %v205_v23 = vld [vmem:[%s3104_s24 + $0x8] sm:$0xff]  ;;  %v285_v31 = vld [vmem:[%s3864_s1 + $0xf8] sm:$0xff]  ;;  %v316_v32 = vld [vmem:[%s3864_s1 + $0x1f0] sm:$0xff]  ;;  %513 = vmatprep.mubr.f32.mxu1 %v207_v24  ;;  %v3151_v35 = vpack.c.bf16 %v267_v18, %v266_v15 }
  0x19   : > { %v299_v28 = vld [vmem:[%s3864_s1 + $0x168] sm:$0xff]  ;;  %398 = vmatprep.mubr.f32.mxu0 %v205_v23  ;;  %v317_v33 = vld [vmem:[%s3864_s1 + $0x1f8] sm:$0xff]  ;;  %v3157_v37 = vpack.c.bf16 %v285_v31, %v284_v29  ;;  %v268_v40 = vld [vmem:[%s3864_s1 + $0x70] sm:$0xff] }
  0x1a   : > { %2449 = vmatpush3.bf16.msra.mxu0 %v3072_v62  ;;  %v3155_v36 = vpack.c.bf16 %v299_v28, %v298_v22  ;;  %v269_v41 = vld [vmem:[%s3864_s1 + $0x78] sm:$0xff]  ;;  %v300_v42 = vld [vmem:[%s3864_s1 + $0x170] sm:$0xff]  ;;  %v3169_v44 = vpack.c.bf16 %v317_v33, %v316_v32  ;;  %v318_v46 = vld [vmem:[%s3864_s1 + $0x200] sm:$0xff] }
  0x1b   : > { %2481 = vmatpush3.bf16.msra.mxu1 %v3076_v63  ;;  %2451 = vmatprep.subr.bf16.mxu0 %v3078_v0  ;;  %v301_v45 = vld [vmem:[%s3864_s1 + $0x178] sm:$0xff]  ;;  %v319_v47 = vld [vmem:[%s3864_s1 + $0x208] sm:$0xff]  ;;  %v3181_v48 = vpack.c.bf16 %v269_v41, %v268_v40  ;;  %v320_v54 = vld [vmem:[%s3864_s1 + $0x210] sm:$0xff] }
  0x1c   : > { %2483 = vmatprep.subr.bf16.mxu1 %v3090_v5  ;;  %v3185_v49 = vpack.c.bf16 %v301_v45, %v300_v42  ;;  %v3187_v53 = vpack.c.bf16 %v319_v47, %v318_v46  ;;  %v321_v55 = vld [vmem:[%s3864_s1 + $0x218] sm:$0xff]  ;;  %v204_v57 = vld [vmem:[%s3104_s24] sm:$0xff]  ;;  %v206_v58 = vld [vmem:[%s3104_s24 + $0x10] sm:$0xff] }
  0x1d   : > { %v210_v59 = vld [vmem:[%s3104_s24 + $0x30] sm:$0xff]  ;;  %v212_v60 = vld [vmem:[%s3104_s24 + $0x40] sm:$0xff]  ;;  %v3203_v61 = vpack.c.bf16 %v321_v55, %v320_v54  ;;  %v323_v2 = vld [vmem:[%s3864_s1 + $0x228] sm:$0xff] }
  0x1e   : > { %2453 = vmatpush3.bf16.msra.mxu0 %v3113_v14  ;;  %v322_v1 = vld [vmem:[%s3864_s1 + $0x220] sm:$0xff]  ;;  %v209_v4 = vld [vmem:[%s3104_s24 + $0x28] sm:$0xff]  ;;  %v211_v6 = vld [vmem:[%s3104_s24 + $0x38] sm:$0xff] }
  0x1f   : > { %2485 = vmatpush3.bf16.msra.mxu1 %v3123_v19  ;;  %2455 = vmatprep.subr.bf16.mxu0 %v3125_v20  ;;  %v217_v9 = vld [vmem:[%s3104_s24 + $0x68] sm:$0xff]  ;;  %v3218_v10 = vpack.c.bf16 %v323_v2, %v322_v1  ;;  %v324_v11 = vld [vmem:[%s3864_s1 + $0x230] sm:$0xff]  ;;  %v325_v13 = vld [vmem:[%s3864_s1 + $0x238] sm:$0xff] }
  0x20   : > { %2487 = vmatprep.subr.bf16.mxu1 %v3133_v27  ;;  %v214_v15 = vld [vmem:[%s3104_s24 + $0x50] sm:$0xff]  ;;  %v216_v18 = vld [vmem:[%s3104_s24 + $0x60] sm:$0xff]  ;;  %v3232_v24 = vpack.c.bf16 %v325_v13, %v324_v11  ;;  %v327_v29 = vld [vmem:[%s3864_s1 + $0x248] sm:$0xff] }
  0x21   : > { %v220_v22 = vld [vmem:[%s3104_s24 + $0x80] sm:$0xff]  ;;  %v222_v23 = vld [vmem:[%s3104_s24 + $0x90] sm:$0xff]  ;;  %v219_v31 = vld [vmem:[%s3104_s24 + $0x78] sm:$0xff] }
  0x22   : > { %2457 = vmatpush3.bf16.msra.mxu0 %v3151_v35  ;;  %v326_v28 = vld [vmem:[%s3864_s1 + $0x240] sm:$0xff]  ;;  %v225_v32 = vld [vmem:[%s3104_s24 + $0xa8] sm:$0xff]  ;;  %v227_v33 = vld [vmem:[%s3104_s24 + $0xb8] sm:$0xff] }
  0x23   : > { %2489 = vmatpush3.bf16.msra.mxu1 %v3155_v36  ;;  %2459 = vmatprep.subr.bf16.mxu0 %v3157_v37  ;;  %v3248_v40 = vpack.c.bf16 %v327_v29, %v326_v28  ;;  %v329_v41 = vld [vmem:[%s3864_s1 + $0x258] sm:$0xff]  ;;  %v224_v42 = vld [vmem:[%s3104_s24 + $0xa0] sm:$0xff]  ;;  %v226_v45 = vld [vmem:[%s3104_s24 + $0xb0] sm:$0xff] }
  0x24   : > { %2491 = vmatprep.subr.bf16.mxu1 %v3169_v44  ;;  %v230_v46 = vld [vmem:[%s3104_s24 + $0xd0] sm:$0xff]  ;;  %v232_v47 = vld [vmem:[%s3104_s24 + $0xe0] sm:$0xff]  ;;  %v333_v2 = vld [vmem:[%s3864_s1 + $0x278] sm:$0xff] }
  0x25   : > { %v330_v55 = vld [vmem:[%s3864_s1 + $0x260] sm:$0xff]  ;;  %v239_v13 = vld [vmem:[%s3104_s24 + $0x118] sm:$0xff]  ;;  %v249_v29 = vld [vmem:[%s3104_s24 + $0x168] sm:$0xff] }
  0x26   : > { %2461 = vmatpush3.bf16.msra.mxu0 %v3181_v48  ;;  %v252_v28 = vld [vmem:[%s3104_s24 + $0x180] sm:$0xff] }
  0x27   : > { %2493 = vmatpush3.bf16.msra.mxu1 %v3185_v49  ;;  %2495 = vmatprep.subr.bf16.mxu0 %v3187_v53 }
  0x28   : > { %2527 = vmatprep.subr.bf16.mxu1 %v2889_v3  ;;  %v215_v3 = vld [vmem:[%s3104_s24 + $0x58] sm:$0xff] }
  0x29   : > { %399 = vmatmul.mubr.f32.vlgmr.msra.gmra.mrb[0].mxu0 %v204_v57  ;;  %v331_v57 = vld [vmem:[%s3864_s1 + $0x268] sm:$0xff] }
  0x2a   : > { %514 = vmatmul.mubr.f32.vlgmr.msra.gmra.mrb[0].mxu1 %v206_v58  ;;  %2497 = vmatpush3.bf16.msra.mxu0 %v3187_v53  ;;  %v229_v58 = vld [vmem:[%s3104_s24 + $0xc8] sm:$0xff]  ;;  %v3278_v1 = vpack.c.bf16 %v331_v57, %v330_v55 }
  0x2b   : > { %403 = vmatprep.mubr.f32.mxu0 %v210_v59  ;;  %518 = vmatprep.mubr.f32.mxu1 %v212_v60  ;;  %v231_v59 = vld [vmem:[%s3104_s24 + $0xd8] sm:$0xff]  ;;  %v237_v60 = vld [vmem:[%s3104_s24 + $0x108] sm:$0xff] }
  0x2c   : > { %2499 = vmatprep.subr.bf16.mxu0 %v3203_v61 }
  0x2d   : > { %404 = vmatmul.mubr.f32.gmra.mrb[2].mxu0 %v209_v4  ;;  %v234_v4 = vld [vmem:[%s3104_s24 + $0xf0] sm:$0xff] }
  0x2e   : > { %519 = vmatmul.mubr.f32.gmra.mrb[2].mxu1 %v211_v6  ;;  %2501 = vmatpush3.bf16.msra.mxu0 %v3203_v61  ;;  %v236_v6 = vld [vmem:[%s3104_s24 + $0x100] sm:$0xff] }
  0x2f   : > { %408 = vmatprep.mubr.f32.mxu0 %v215_v3  ;;  %523 = vmatprep.mubr.f32.mxu1 %v217_v9  ;;  %v240_v3 = vld [vmem:[%s3104_s24 + $0x120] sm:$0xff]  ;;  %v242_v9 = vld [vmem:[%s3104_s24 + $0x130] sm:$0xff] }
  0x30   : > { %2503 = vmatprep.subr.bf16.mxu0 %v3218_v10  ;;  %2529 = vmatpush3.bf16.xpose.msra.mxu1 %v2902_v8  ;;  %v221_v8 = vld [vmem:[%s3104_s24 + $0x88] sm:$0xff] }
  0x31   : > { %409 = vmatmul.mubr.f32.gmra.mrb[4].mxu0 %v214_v15  ;;  %2531 = vmatprep.subr.bf16.mxu1 %v2929_v16  ;;  %v328_v16 = vld [vmem:[%s3864_s1 + $0x250] sm:$0xff]  ;;  %v241_v15 = vld [vmem:[%s3104_s24 + $0x128] sm:$0xff] }
  0x32   : > { %524 = vmatmul.mubr.f32.gmra.mrb[4].mxu1 %v216_v18  ;;  %413 = vmatprep.mubr.f32.mxu0 %v220_v22  ;;  %v3262_v54 = vpack.c.bf16 %v329_v41, %v328_v16  ;;  %v245_v18 = vld [vmem:[%s3104_s24 + $0x148] sm:$0xff]  ;;  %v247_v22 = vld [vmem:[%s3104_s24 + $0x158] sm:$0xff]  ;;  %v238_v16 = vld [vmem:[%s3104_s24 + $0x110] sm:$0xff] }
  0x33   : > { %528 = vmatprep.mubr.f32.mxu1 %v222_v23  ;;  %2505 = vmatpush3.bf16.msra.mxu0 %v3218_v10  ;;  %v250_v23 = vld [vmem:[%s3104_s24 + $0x170] sm:$0xff] }
  0x34   : > { %2507 = vmatprep.subr.bf16.mxu0 %v3232_v24 }
  0x35   : > { %414 = vmatmul.mubr.f32.gmra.mrb[6].mxu0 %v219_v31  ;;  %v251_v31 = vld [vmem:[%s3104_s24 + $0x178] sm:$0xff] }
  0x36   : > { %529 = vmatmul.mubr.f32.gmra.mrb[6].mxu1 %v221_v8  ;;  %418 = vmatprep.mubr.f32.mxu0 %v225_v32  ;;  %v208_v8 = vld [vmem:[%s3104_s24 + $0x20] sm:$0xff]  ;;  %v213_v32 = vld [vmem:[%s3104_s24 + $0x48] sm:$0xff] }
  0x37   : > { %533 = vmatprep.mubr.f32.mxu1 %v227_v33  ;;  %2509 = vmatpush3.bf16.msra.mxu0 %v3232_v24  ;;  %v233_v33 = vld [vmem:[%s3104_s24 + $0xe8] sm:$0xff] }
  0x38   : > { %2511 = vmatprep.subr.bf16.mxu0 %v3248_v40  ;;  %2533 = vmatpush3.bf16.xpose.msra.mxu1 %v2943_v21  ;;  %v235_v21 = vld [vmem:[%s3104_s24 + $0xf8] sm:$0xff] }
  0x39   : > { %419 = vmatmul.mubr.f32.gmra.mrb[8].mxu0 %v224_v42  ;;  %2535 = vmatprep.subr.bf16.mxu1 %v2958_v26  ;;  %v332_v26 = vld [vmem:[%s3864_s1 + $0x270] sm:$0xff] }
  0x3a   : > { %534 = vmatmul.mubr.f32.gmra.mrb[8].mxu1 %v226_v45  ;;  %423 = vmatprep.mubr.f32.mxu0 %v230_v46  ;;  %v3292_v11 = vpack.c.bf16 %v333_v2, %v332_v26 }
  0x3b   : > { %538 = vmatprep.mubr.f32.mxu1 %v232_v47  ;;  %2513 = vmatpush3.bf16.msra.mxu0 %v3248_v40 }
  0x3c   : > { %2515 = vmatprep.subr.bf16.mxu0 %v3262_v54 }
  0x3d   : > { %424 = vmatmul.mubr.f32.gmra.mrb[10].mxu0 %v229_v58 }
  0x3e   : > { %539 = vmatmul.mubr.f32.gmra.mrb[10].mxu1 %v231_v59  ;;  %428 = vmatprep.mubr.f32.mxu0 %v235_v21 }
  0x3f   : > { %543 = vmatprep.mubr.f32.mxu1 %v237_v60  ;;  %2517 = vmatpush3.bf16.msra.mxu0 %v3262_v54 }
  0x40   : > { %2519 = vmatprep.subr.bf16.mxu0 %v3278_v1  ;;  %2537 = vmatpush3.bf16.xpose.msra.mxu1 %v2982_v34  ;;  %v244_v34 = vld [vmem:[%s3104_s24 + $0x140] sm:$0xff] }
  0x41   : > { %429 = vmatmul.mubr.f32.gmra.mrb[12].mxu0 %v234_v4  ;;  %2539 = vmatprep.subr.bf16.mxu1 %v2997_v39  ;;  %v246_v39 = vld [vmem:[%s3104_s24 + $0x150] sm:$0xff] }
  0x42   : > { %544 = vmatmul.mubr.f32.gmra.mrb[12].mxu1 %v236_v6  ;;  %433 = vmatprep.mubr.f32.mxu0 %v240_v3 }
  0x43   : > { %548 = vmatprep.mubr.f32.mxu1 %v242_v9  ;;  %2521 = vmatpush3.bf16.msra.mxu0 %v3278_v1 }
  0x44   : > { %2523 = vmatprep.subr.bf16.mxu0 %v3292_v11 }
  0x45   : > { %434 = vmatmul.mubr.f32.gmra.mrb[14].mxu0 %v239_v13 }
  0x46   : > { %549 = vmatmul.mubr.f32.gmra.mrb[14].mxu1 %v241_v15  ;;  %438 = vmatprep.mubr.f32.mxu0 %v245_v18 }
  0x47   : > { %553 = vmatprep.mubr.f32.mxu1 %v247_v22  ;;  %2525 = vmatpush3.bf16.msra.mxu0 %v3292_v11 }
  0x48   : > { %2559 = vmatprep.subr.bf16.mxu0 %v2900_v7  ;;  %2541 = vmatpush3.bf16.xpose.msra.mxu1 %v3035_v50  ;;  %v218_v7 = vld [vmem:[%s3104_s24 + $0x70] sm:$0xff]  ;;  %v223_v50 = vld [vmem:[%s3104_s24 + $0x98] sm:$0xff] }
  0x49   : > { %439 = vmatmul.mubr.f32.gmra.mrb[16].mxu0 %v244_v34  ;;  %2543 = vmatprep.subr.bf16.mxu1 %v3041_v52  ;;  %v228_v52 = vld [vmem:[%s3104_s24 + $0xc0] sm:$0xff] }
  0x4a   : > { %554 = vmatmul.mubr.f32.gmra.mrb[16].mxu1 %v246_v39  ;;  %443 = vmatprep.mubr.f32.mxu0 %v250_v23 }
  0x4b   : > { %558 = vmatprep.mubr.f32.mxu1 %v252_v28 }
  0x4d   : > { %444 = vmatmul.mubr.f32.gmra.mrb[18].mxu0 %v249_v29 }
  0x4e   : > { %559 = vmatmul.mubr.f32.gmra.mrb[18].mxu1 %v251_v31  ;;  %2274 = vmatprep.mubr.f32.mxu0 %v208_v8 }
  0x50   : > { %2545 = vmatpush3.bf16.xpose.msra.mxu1 %v3072_v62  ;;  %v243_v62 = vld [vmem:[%s3104_s24 + $0x138] sm:$0xff] }
  0x51   : > { %2275 = vmatmul.mubr.f32.vlgmr.msra.gmra.mrb[20].mxu0 %v213_v32  ;;  %2547 = vmatprep.subr.bf16.mxu1 %v3078_v0  ;;  %v248_v0 = vld [vmem:[%s3104_s24 + $0x160] sm:$0xff] }
  0x52   : > { %2277 = vmatprep.mubr.f32.mxu0 %v218_v7  ;;  %2561 = vmatpush3.bf16.xpose.msra.mxu0 %v2916_v12  ;;  %v253_v12 = vld [vmem:[%s3104_s24 + $0x188] sm:$0xff] }
  0x53   : > { %2563 = vmatprep.subr.bf16.mxu0 %v2931_v17  ;;  %v1234_v17 = vld [vmem:[%s3866_s3] sm:$0xff] }
  0x55   : > { %2278 = vmatmul.mubr.f32.gmra.mrb[22].mxu0 %v223_v50 }
  0x56   : > { %2280 = vmatprep.mubr.f32.mxu0 %v228_v52 }
  0x58   : > { %2549 = vmatpush3.bf16.xpose.msra.mxu1 %v3113_v14 }
  0x59   : > { %2281 = vmatmul.mubr.f32.gmra.mrb[24].mxu0 %v233_v33  ;;  %2551 = vmatprep.subr.bf16.mxu1 %v3125_v20 }
  0x5a   : > { %2283 = vmatprep.mubr.f32.mxu0 %v238_v16  ;;  %2565 = vmatpush3.bf16.xpose.msra.mxu0 %v2956_v25  ;;  %v1235_v25 = vld [vmem:[%s3866_s3 + $0x8] sm:$0xff] }
  0x5b   : > { %2567 = vmatprep.subr.bf16.mxu0 %v2970_v30  ;;  %v3351_v30 = vpack.c.bf16 %v1235_v25, %v1234_v17 }
  0x5d   : > { %2284 = vmatmul.mubr.f32.gmra.mrb[26].mxu0 %v243_v62 }
  0x5e   : > { %2286 = vmatprep.mubr.f32.mxu0 %v248_v0 }
  0x60   : > { %2553 = vmatpush3.bf16.xpose.msra.mxu1 %v3151_v35 }
  0x61   : > { %2287 = vmatmul.mubr.f32.gmra.mrb[28].mxu0 %v253_v12  ;;  %2555 = vmatprep.subr.bf16.mxu1 %v3157_v37 }
  0x62   : > { %2569 = vmatpush3.bf16.xpose.msra.mxu0 %v2995_v38 }
  0x63   : > { %2571 = vmatprep.subr.bf16.mxu0 %v3009_v43 }
  0x68   : > { %2557 = vmatpush3.bf16.xpose.msra.mxu1 %v3181_v48 }
  0x69   : > { %2591 = vmatprep.subr.bf16.mxu1 %v3187_v53 }
  0x6a   : > { %2573 = vmatpush3.bf16.xpose.msra.mxu0 %v3039_v51 }
  0x6b   : > { %2575 = vmatprep.subr.bf16.mxu0 %v3053_v56 }
  0x72   : > { %2577 = vmatpush3.bf16.xpose.msra.mxu0 %v3076_v63 }
  0x73   : > { %2579 = vmatprep.subr.bf16.mxu0 %v3090_v5 }
  0x7a   : > { %2581 = vmatpush3.bf16.xpose.msra.mxu0 %v3123_v19 }
  0x7b   : > { %2583 = vmatprep.subr.bf16.mxu0 %v3133_v27 }
  0x82   : > { %2585 = vmatpush3.bf16.xpose.msra.mxu0 %v3155_v36 }
  0x83   : > { %2587 = vmatprep.subr.bf16.mxu0 %v3169_v44 }
  0x8a   : > { %2589 = vmatpush3.bf16.xpose.msra.mxu0 %v3185_v49 }
  0x8b   : > { %2623 = vmatprep.subr.bf16.mxu0 %v3351_v30 }
  0xfc   : > { %v1818_v38 = vpop.f32.mrb[0].mxu0 }
  0xfd   : > { %v1880_v43 = vpop.f32.mrb[0].mxu1  ;;  %v1819_v51 = vpop.f32.mrb[1].mxu0 }
  0xfe   : > { %v1820_v56 = vadd.f32 %v1819_v51, %v1818_v38  ;;  %v1881_v63 = vpop.f32.mrb[1].mxu1 }
  0xff   : > { %v1882_v5 = vadd.f32 %v1881_v63, %v1880_v43 }
 0x100   : > { %v1821_v14 = vpop.f32.mrb[2].mxu0 }
 0x101   : > { %v1883_v19 = vpop.f32.mrb[2].mxu1  ;;  %v1822_v20 = vpop.f32.mrb[3].mxu0  ;;  %v3354_v27 = vadd.f32 %v1882_v5, %v1820_v56 }
 0x102   : > { %v1823_v35 = vadd.f32 %v1822_v20, %v1821_v14  ;;  %v1884_v36 = vpop.f32.mrb[3].mxu1 }
 0x103   : > { %v1885_v37 = vadd.f32 %v1884_v36, %v1883_v19 }
 0x104   : > { %v1824_v44 = vpop.f32.mrb[4].mxu0 }
 0x105   : > { %v1886_v48 = vpop.f32.mrb[4].mxu1  ;;  %v1825_v49 = vpop.f32.mrb[5].mxu0  ;;  %v521_v41 = vadd.f32 %v1885_v37, %v1823_v35 }
 0x106   : > { %v1826_v42 = vadd.f32 %v1825_v49, %v1824_v44  ;;  %v1887_v45 = vpop.f32.mrb[5].mxu1 }
 0x107   : > { %v1888_v46 = vadd.f32 %v1887_v45, %v1886_v48 }
 0x108   : > { %v1827_v47 = vpop.f32.mrb[6].mxu0 }
 0x109   : > { %v1889_v55 = vpop.f32.mrb[6].mxu1  ;;  %v1828_v57 = vpop.f32.mrb[7].mxu0  ;;  %v526_v58 = vadd.f32 %v1888_v46, %v1826_v42 }
 0x10a   : > { %v1829_v59 = vadd.f32 %v1828_v57, %v1827_v47  ;;  %v1890_v21 = vpop.f32.mrb[7].mxu1  ;;  %v1236_v57 = vld [vmem:[%s3866_s3 + $0x10] sm:$0xff] }
 0x10b   : > { %v1891_v60 = vadd.f32 %v1890_v21, %v1889_v55 }
 0x10c   : > { %v1830_v26 = vpop.f32.mrb[8].mxu0 }
 0x10d   : > { %v1892_v2 = vpop.f32.mrb[8].mxu1  ;;  %v1831_v4 = vpop.f32.mrb[9].mxu0  ;;  %v531_v6 = vadd.f32 %v1891_v60, %v1829_v59  ;;  %v1237_v59 = vld [vmem:[%s3866_s3 + $0x18] sm:$0xff] }
 0x10e   : > { %v1832_v3 = vadd.f32 %v1831_v4, %v1830_v26  ;;  %v1893_v9 = vpop.f32.mrb[9].mxu1  ;;  %v2626_v60 = vpack.c.bf16 %v1237_v59, %v1236_v57 }
 0x10f   : > { %v1894_v13 = vadd.f32 %v1893_v9, %v1892_v2 }
 0x110   : > { %v1833_v15 = vpop.f32.mrb[10].mxu0 }
 0x111   : > { %v1895_v18 = vpop.f32.mrb[10].mxu1  ;;  %v1834_v22 = vpop.f32.mrb[11].mxu0  ;;  %v536_v34 = vadd.f32 %v1894_v13, %v1832_v3 }
 0x112   : > { %v1835_v39 = vadd.f32 %v1834_v22, %v1833_v15  ;;  %v1896_v23 = vpop.f32.mrb[11].mxu1  ;;  %v1240_v15 = vld [vmem:[%s3866_s3 + $0x30] sm:$0xff] }
 0x113   : > { %v1897_v28 = vadd.f32 %v1896_v23, %v1895_v18  ;;  %v1241_v18 = vld [vmem:[%s3866_s3 + $0x38] sm:$0xff] }
 0x114   : > { %v1836_v29 = vpop.f32.mrb[12].mxu0 }
 0x115   : > { %v1898_v31 = vpop.f32.mrb[12].mxu1  ;;  %v1837_v8 = vpop.f32.mrb[13].mxu0  ;;  %v541_v32 = vadd.f32 %v1897_v28, %v1835_v39  ;;  %v2634_v39 = vpack.c.bf16 %v1241_v18, %v1240_v15  ;;  %v1161_v15 = vld [vmem:[%s3865_s2 + $0x88] sm:$0xff]  ;;  %v1184_v18 = vld [vmem:[%s3865_s2 + $0x140] sm:$0xff] }
 0x116   : > { %v1838_v7 = vadd.f32 %v1837_v8, %v1836_v29  ;;  %v1899_v50 = vpop.f32.mrb[13].mxu1  ;;  %v1243_v29 = vld [vmem:[%s3866_s3 + $0x48] sm:$0xff] }
 0x117   : > { %v1900_v52 = vadd.f32 %v1899_v50, %v1898_v31 }
 0x118   : > { %v1839_v33 = vpop.f32.mrb[14].mxu0 }
 0x119   : > { %v1901_v16 = vpop.f32.mrb[14].mxu1  ;;  %v1840_v62 = vpop.f32.mrb[15].mxu0  ;;  %v546_v0 = vadd.f32 %v1900_v52, %v1838_v7  ;;  %v1245_v7 = vld [vmem:[%s3866_s3 + $0x58] sm:$0xff]  ;;  %v1246_v52 = vld [vmem:[%s3866_s3 + $0x60] sm:$0xff] }
 0x11a   : > { %v1841_v12 = vadd.f32 %v1840_v62, %v1839_v33  ;;  %v1902_v17 = vpop.f32.mrb[15].mxu1  ;;  %v1249_v62 = vld [vmem:[%s3866_s3 + $0x78] sm:$0xff] }
 0x11b   : > { %v1903_v25 = vadd.f32 %v1902_v17, %v1901_v16  ;;  %v1248_v16 = vld [vmem:[%s3866_s3 + $0x70] sm:$0xff] }
 0x11c   : > { %v1842_v38 = vpop.f32.mrb[16].mxu0 }
 0x11d   : > { %v1904_v43 = vpop.f32.mrb[16].mxu1  ;;  %v1843_v51 = vpop.f32.mrb[17].mxu0  ;;  %v551_v56 = vadd.f32 %v1903_v25, %v1841_v12  ;;  %v1192_v12 = vld [vmem:[%s3865_s2 + $0x180] sm:$0xff] }
 0x11e   : > { %v1844_v63 = vadd.f32 %v1843_v51, %v1842_v38  ;;  %v1905_v5 = vpop.f32.mrb[17].mxu1  ;;  %v1176_v38 = vld [vmem:[%s3865_s2 + $0x100] sm:$0xff]  ;;  %v1195_v51 = vld [vmem:[%s3865_s2 + $0x198] sm:$0xff] }
 0x11f   : > { %v1906_v14 = vadd.f32 %v1905_v5, %v1904_v43  ;;  %v1177_v43 = vld [vmem:[%s3865_s2 + $0x108] sm:$0xff] }
 0x120   : > { %v1845_v19 = vpop.f32.mrb[18].mxu0 }
 0x121   : > { %v1907_v20 = vpop.f32.mrb[18].mxu1  ;;  %v1846_v35 = vpop.f32.mrb[19].mxu0  ;;  %v556_v36 = vadd.f32 %v1906_v14, %v1844_v63  ;;  %v2688_v63 = vpack.c.bf16 %v1177_v43, %v1176_v38  ;;  %v1147_v38 = vld [vmem:[%s3865_s2 + $0x18] sm:$0xff]  ;;  %v1164_v43 = vld [vmem:[%s3865_s2 + $0xa0] sm:$0xff] }
 0x122   : > { %v1847_v37 = vadd.f32 %v1846_v35, %v1845_v19  ;;  %v1908_v44 = vpop.f32.mrb[19].mxu1  ;;  %v1178_v19 = vld [vmem:[%s3865_s2 + $0x110] sm:$0xff]  ;;  %v1196_v35 = vld [vmem:[%s3865_s2 + $0x1a0] sm:$0xff] }
 0x123   : > { %v1909_v48 = vadd.f32 %v1908_v44, %v1907_v20  ;;  %v1179_v20 = vld [vmem:[%s3865_s2 + $0x118] sm:$0xff] }
 0x124   : > { %v2276_v49 = vpop.f32.mrb[20].mxu0  ;;  %v2692_v44 = vpack.c.bf16 %v1179_v20, %v1178_v19  ;;  %v1150_v20 = vld [vmem:[%s3865_s2 + $0x30] sm:$0xff] }
 0x125   : > { %v3356_v42 = vadd.f32 %v2276_v49, %v521_v41  ;;  %v630_v45 = vpop.f32.mrb[21].mxu0  ;;  %v561_v46 = vadd.f32 %v1909_v48, %v1847_v37 }
 0x126   : > { %v3359_v47 = vadd.f32 %v630_v45, %v3354_v27  ;;  %v1180_v45 = vld [vmem:[%s3865_s2 + $0x120] sm:$0xff] }
 0x128   : > { %v2279_v55 = vpop.f32.mrb[22].mxu0  ;;  %1968 = vmatprep.mubr.f32.mxu1 %v3359_v47  ;;  %2020 = vmatprep.mubr.f32.mxu0 %v3359_v47  ;;  %v1224_v25 = vmul.f32 %v3359_v47, %v3359_v47 }
 0x129   : > { %v3369_v41 = vadd.f32 %v2279_v55, %v531_v6  ;;  %v640_v21 = vpop.f32.mrb[23].mxu0  ;;  %1969 = vmatmul.mubr.f32.vlgmr.msra.gmra.mrb[20].mxu1 %v3359_v47  ;;  %2021 = vmatmul.mubr.f32.vlgmr.msra.gmra.mrb[30].mxu0 %v3359_v47 }
 0x12a   : > { %v3373_v27 = vadd.f32 %v640_v21, %v526_v58  ;;  %2593 = vmatpush3.bf16.xpose.msra.mxu1 %v3187_v53  ;;  %1970 = vmatprep.mubr.f32.mxu1 %v3356_v42  ;;  %v1238_v53 = vld [vmem:[%s3866_s3 + $0x20] sm:$0xff]  ;;  %v1239_v58 = vld [vmem:[%s3866_s3 + $0x28] sm:$0xff] }
 0x12b   : > { %2022 = vmatprep.mubr.f32.mxu0 %v3356_v42  ;;  %2595 = vmatprep.subr.bf16.mxu1 %v3203_v61  ;;  %v2630_v3 = vpack.c.bf16 %v1239_v58, %v1238_v53  ;;  %v1227_v37 = vmul.f32 %v3369_v41, %v3369_v41  ;;  %v1201_v53 = vld [vmem:[%s3865_s2 + $0x1c8] sm:$0xff] }
 0x12c   : > { %v2282_v26 = vpop.f32.mrb[24].mxu0  ;;  %2625 = vmatpush3.bf16.msra.mxu0 %v3351_v30  ;;  %v1226_v5 = vmul.f32 %v3373_v27, %v3373_v27 }
 0x12d   : > { %v3380_v2 = vadd.f32 %v2282_v26, %v541_v32  ;;  %v650_v4 = vpop.f32.mrb[25].mxu0  ;;  %1971 = vmatmul.mubr.f32.gmra.mrb[22].mxu1 %v3356_v42  ;;  %2023 = vmatmul.mubr.f32.gmra.mrb[32].mxu0 %v3356_v42  ;;  %v1244_v32 = vld [vmem:[%s3866_s3 + $0x50] sm:$0xff]  ;;  %v1183_v26 = vld [vmem:[%s3865_s2 + $0x138] sm:$0xff] }
 0x12e   : > { %v3390_v6 = vadd.f32 %v650_v4, %v536_v34  ;;  %1972 = vmatprep.mubr.f32.mxu1 %v3373_v27  ;;  %2024 = vmatprep.mubr.f32.mxu0 %v3373_v27  ;;  %v2642_v50 = vpack.c.bf16 %v1245_v7, %v1244_v32  ;;  %v1200_v4 = vld [vmem:[%s3865_s2 + $0x1c0] sm:$0xff]  ;;  %v1186_v7 = vld [vmem:[%s3865_s2 + $0x150] sm:$0xff] }
 0x12f   : > { %2627 = vmatprep.subr.bf16.mxu0 %v2626_v60  ;;  %v1229_v55 = vmul.f32 %v3380_v2, %v3380_v2 }
 0x130   : > { %v2285_v30 = vpop.f32.mrb[26].mxu0  ;;  %2629 = vmatpush3.bf16.msra.mxu0 %v2626_v60  ;;  %v1228_v48 = vmul.f32 %v3390_v6, %v3390_v6  ;;  %v1182_v60 = vld [vmem:[%s3865_s2 + $0x130] sm:$0xff] }
 0x131   : > { %v3394_v9 = vadd.f32 %v2285_v30, %v551_v56  ;;  %v660_v13 = vpop.f32.mrb[27].mxu0  ;;  %1973 = vmatmul.mubr.f32.gmra.mrb[24].mxu1 %v3373_v27  ;;  %2025 = vmatmul.mubr.f32.gmra.mrb[34].mxu0 %v3373_v27  ;;  %v1225_v56 = vmul.f32 %v3356_v42, %v3356_v42  ;;  %v1160_v30 = vld [vmem:[%s3865_s2 + $0x80] sm:$0xff] }
 0x132   : > { %v3404_v22 = vadd.f32 %v660_v13, %v546_v0  ;;  %2597 = vmatpush3.bf16.xpose.msra.mxu1 %v3203_v61  ;;  %1974 = vmatprep.mubr.f32.mxu1 %v3369_v41  ;;  %v1242_v61 = vld [vmem:[%s3866_s3 + $0x40] sm:$0xff]  ;;  %v2650_v0 = vpack.c.bf16 %v1249_v62, %v1248_v16  ;;  %v1145_v16 = vld [vmem:[%s3865_s2 + $0x8] sm:$0xff] }
 0x133   : > { %2026 = vmatprep.mubr.f32.mxu0 %v3369_v41  ;;  %2599 = vmatprep.subr.bf16.mxu1 %v3218_v10  ;;  %v2638_v8 = vpack.c.bf16 %v1243_v29, %v1242_v61  ;;  %v1231_v58 = vmul.f32 %v3394_v9, %v3394_v9  ;;  %v2654_v29 = vpack.c.bf16 %v1161_v15, %v1160_v30  ;;  %v1207_v30 = vld [vmem:[%s3865_s2 + $0x1f8] sm:$0xff] }
 0x134   : > { %v2288_v34 = vpop.f32.mrb[28].mxu0  ;;  %2631 = vmatprep.subr.bf16.mxu0 %v2630_v3  ;;  %v1230_v59 = vmul.f32 %v3404_v22, %v3404_v22 }
 0x135   : > { %v3410_v23 = vadd.f32 %v2288_v34, %v561_v46  ;;  %v670_v28 = vpop.f32.mrb[29].mxu0  ;;  %1975 = vmatmul.mubr.f32.gmra.mrb[26].mxu1 %v3369_v41  ;;  %2027 = vmatmul.mubr.f32.gmra.mrb[36].mxu0 %v3369_v41  ;;  %v1198_v46 = vld [vmem:[%s3865_s2 + $0x1b0] sm:$0xff]  ;;  %v1185_v34 = vld [vmem:[%s3865_s2 + $0x148] sm:$0xff] }
 0x136   : > { %v3420_v31 = vadd.f32 %v670_v28, %v556_v36  ;;  %1976 = vmatprep.mubr.f32.mxu1 %v3390_v6  ;;  %2028 = vmatprep.mubr.f32.mxu0 %v3390_v6  ;;  %v1197_v36 = vld [vmem:[%s3865_s2 + $0x1a8] sm:$0xff]  ;;  %v1203_v28 = vld [vmem:[%s3865_s2 + $0x1d8] sm:$0xff] }
 0x137   : > { %2633 = vmatpush3.bf16.msra.mxu0 %v2630_v3  ;;  %v2694_v49 = vpack.c.bf16 %v1197_v36, %v1196_v35  ;;  %v2700_v3 = vpack.c.bf16 %v1183_v26, %v1182_v60  ;;  %v1233_v61 = vmul.f32 %v3410_v23, %v3410_v23  ;;  %v1151_v35 = vld [vmem:[%s3865_s2 + $0x38] sm:$0xff]  ;;  %v1168_v36 = vld [vmem:[%s3865_s2 + $0xc0] sm:$0xff]  ;;  %v1174_v26 = vld [vmem:[%s3865_s2 + $0xf0] sm:$0xff] }
 0x138   : > { %2635 = vmatprep.subr.bf16.mxu0 %v2634_v39  ;;  %v1232_v13 = vmul.f32 %v3420_v31, %v3420_v31 }
 0x139   : > { %1977 = vmatmul.mubr.f32.gmra.mrb[28].mxu1 %v3390_v6  ;;  %2029 = vmatmul.mubr.f32.gmra.mrb[38].mxu0 %v3390_v6 }
 0x13a   : > { %2601 = vmatpush3.bf16.xpose.msra.mxu1 %v3218_v10  ;;  %1978 = vmatprep.mubr.f32.mxu1 %v3380_v2  ;;  %v1247_v10 = vld [vmem:[%s3866_s3 + $0x68] sm:$0xff] }
 0x13b   : > { %2030 = vmatprep.mubr.f32.mxu0 %v3380_v2  ;;  %2637 = vmatpush3.bf16.msra.mxu0 %v2634_v39  ;;  %v2646_v33 = vpack.c.bf16 %v1247_v10, %v1246_v52  ;;  %v1202_v39 = vld [vmem:[%s3865_s2 + $0x1d0] sm:$0xff]  ;;  %v1204_v52 = vld [vmem:[%s3865_s2 + $0x1e0] sm:$0xff]  ;;  %v1205_v10 = vld [vmem:[%s3865_s2 + $0x1e8] sm:$0xff] }
 0x13c   : > { %2603 = vmatprep.subr.bf16.mxu1 %v3232_v24  ;;  %2639 = vmatprep.subr.bf16.mxu0 %v2638_v8  ;;  %v2706_v32 = vpack.c.bf16 %v1203_v28, %v1202_v39 }
 0x13d   : > { %1979 = vmatmul.mubr.f32.gmra.mrb[30].mxu1 %v3380_v2  ;;  %2031 = vmatmul.mubr.f32.gmra.mrb[40].mxu0 %v3380_v2 }
 0x13e   : > { %1980 = vmatprep.mubr.f32.mxu1 %v3404_v22  ;;  %2032 = vmatprep.mubr.f32.mxu0 %v3404_v22 }
 0x13f   : > { %2641 = vmatpush3.bf16.msra.mxu0 %v2638_v8  ;;  %v2704_v8 = vpack.c.bf16 %v1185_v34, %v1184_v18  ;;  %v1190_v18 = vld [vmem:[%s3865_s2 + $0x170] sm:$0xff]  ;;  %v1191_v34 = vld [vmem:[%s3865_s2 + $0x178] sm:$0xff] }
 0x140   : > { %2643 = vmatprep.subr.bf16.mxu0 %v2642_v50  ;;  %v2716_v39 = vpack.c.bf16 %v1191_v34, %v1190_v18 }
 0x141   : > { %1981 = vmatmul.mubr.f32.gmra.mrb[32].mxu1 %v3404_v22  ;;  %2033 = vmatmul.mubr.f32.gmra.mrb[42].mxu0 %v3404_v22 }
 0x142   : > { %2605 = vmatpush3.bf16.xpose.msra.mxu1 %v3232_v24  ;;  %1982 = vmatprep.mubr.f32.mxu1 %v3394_v9  ;;  %v1193_v24 = vld [vmem:[%s3865_s2 + $0x188] sm:$0xff] }
 0x143   : > { %2034 = vmatprep.mubr.f32.mxu0 %v3394_v9  ;;  %2645 = vmatpush3.bf16.msra.mxu0 %v2642_v50  ;;  %v2686_v17 = vpack.c.bf16 %v1193_v24, %v1192_v12  ;;  %v1187_v50 = vld [vmem:[%s3865_s2 + $0x158] sm:$0xff] }
 0x144   : > { %2607 = vmatprep.subr.bf16.mxu1 %v3248_v40  ;;  %2647 = vmatprep.subr.bf16.mxu0 %v2646_v33  ;;  %v2708_v62 = vpack.c.bf16 %v1187_v50, %v1186_v7  ;;  %v1163_v12 = vld [vmem:[%s3865_s2 + $0x98] sm:$0xff]  ;;  %v2789_v50 = vld [vmem:[%s3104_s24] sm:$0xff] }
 0x145   : > { %1983 = vmatmul.mubr.f32.gmra.mrb[34].mxu1 %v3394_v9  ;;  %2035 = vmatmul.mubr.f32.gmra.mrb[44].mxu0 %v3394_v9 }
 0x146   : > { %1984 = vmatprep.mubr.f32.mxu1 %v3420_v31  ;;  %2036 = vmatprep.mubr.f32.mxu0 %v3420_v31 }
 0x147   : > { %2649 = vmatpush3.bf16.msra.mxu0 %v2646_v33  ;;  %v1144_v33 = vld [vmem:[%s3865_s2] sm:$0xff] }
 0x148   : > { %2651 = vmatprep.subr.bf16.mxu0 %v2650_v0  ;;  %v2656_v24 = vpack.c.bf16 %v1145_v16, %v1144_v33 }
 0x149   : > { %1985 = vmatmul.mubr.f32.gmra.mrb[36].mxu1 %v3420_v31  ;;  %2037 = vmatmul.mubr.f32.gmra.mrb[46].mxu0 %v3420_v31 }
 0x14a   : > { %2609 = vmatpush3.bf16.xpose.msra.mxu1 %v3248_v40  ;;  %1986 = vmatprep.mubr.f32.mxu1 %v3410_v23  ;;  %v1194_v40 = vld [vmem:[%s3865_s2 + $0x190] sm:$0xff] }
 0x14b   : > { %2038 = vmatprep.mubr.f32.mxu0 %v3410_v23  ;;  %2653 = vmatpush3.bf16.msra.mxu0 %v2650_v0  ;;  %v2690_v14 = vpack.c.bf16 %v1195_v51, %v1194_v40  ;;  %v1162_v0 = vld [vmem:[%s3865_s2 + $0x90] sm:$0xff]  ;;  %v1165_v40 = vld [vmem:[%s3865_s2 + $0xa8] sm:$0xff] }
 0x14c   : > { %2611 = vmatprep.subr.bf16.mxu1 %v3262_v54  ;;  %2687 = vmatprep.subr.bf16.mxu0 %v2686_v17  ;;  %v2658_v17 = vpack.c.bf16 %v1163_v12, %v1162_v0  ;;  %v1210_v0 = vld [vmem:[%s3865_s2 + $0x210] sm:$0xff]  ;;  %v1211_v12 = vld [vmem:[%s3865_s2 + $0x218] sm:$0xff] }
 0x14d   : > { %1987 = vmatmul.mubr.f32.gmra.mrb[38].mxu1 %v3410_v23  ;;  %2039 = vmatmul.mubr.f32.gmra.mrb[48].mxu0 %v3410_v23 }
 0x14e   : > { %2321 = vmatprep.mubr.f32.mxu1 %v3359_v47  ;;  %2368 = vmatprep.mubr.f32.mxu0 %v1224_v25  ;;  %v1199_v47 = vld [vmem:[%s3865_s2 + $0x1b8] sm:$0xff]  ;;  %v1146_v25 = vld [vmem:[%s3865_s2 + $0x10] sm:$0xff] }
 0x14f   : > { %v2698_v21 = vpack.c.bf16 %v1199_v47, %v1198_v46  ;;  %v2660_v51 = vpack.c.bf16 %v1147_v38, %v1146_v25  ;;  %v1155_v46 = vld [vmem:[%s3865_s2 + $0x58] sm:$0xff]  ;;  %v1172_v47 = vld [vmem:[%s3865_s2 + $0xe0] sm:$0xff] }
 0x151   : > { %2369 = vmatmul.mubr.f32.vlgmr.msra.gmra.mrb[50].mxu0 %v1225_v56  ;;  %v2662_v56 = vpack.c.bf16 %v1165_v40, %v1164_v43 }
 0x152   : > { %2613 = vmatpush3.bf16.xpose.msra.mxu1 %v3262_v54  ;;  %2371 = vmatprep.mubr.f32.mxu0 %v1226_v5  ;;  %v1181_v54 = vld [vmem:[%s3865_s2 + $0x128] sm:$0xff] }
 0x153   : > { %2615 = vmatprep.subr.bf16.mxu1 %v3278_v1  ;;  %2689 = vmatpush3.bf16.msra.mxu0 %v2688_v63  ;;  %v2696_v57 = vpack.c.bf16 %v1181_v54, %v1180_v45  ;;  %v1148_v63 = vld [vmem:[%s3865_s2 + $0x20] sm:$0xff]  ;;  %v1149_v5 = vld [vmem:[%s3865_s2 + $0x28] sm:$0xff]  ;;  %v1154_v54 = vld [vmem:[%s3865_s2 + $0x50] sm:$0xff] }
 0x154   : > { %2691 = vmatprep.subr.bf16.mxu0 %v2690_v14  ;;  %v1166_v14 = vld [vmem:[%s3865_s2 + $0xb0] sm:$0xff] }
 0x155   : > { %2372 = vmatmul.mubr.f32.gmra.mrb[52].mxu0 %v1227_v37 }
 0x156   : > { %2374 = vmatprep.mubr.f32.mxu0 %v1228_v48  ;;  %v1153_v48 = vld [vmem:[%s3865_s2 + $0x48] sm:$0xff] }
 0x157   : > { %2693 = vmatpush3.bf16.msra.mxu0 %v2692_v44  ;;  %v1152_v44 = vld [vmem:[%s3865_s2 + $0x40] sm:$0xff] }
 0x158   : > { %2695 = vmatprep.subr.bf16.mxu0 %v2694_v49  ;;  %v1170_v49 = vld [vmem:[%s3865_s2 + $0xd0] sm:$0xff] }
 0x159   : > { %2375 = vmatmul.mubr.f32.gmra.mrb[54].mxu0 %v1229_v55  ;;  %v1188_v55 = vld [vmem:[%s3865_s2 + $0x160] sm:$0xff] }
 0x15a   : > { %2617 = vmatpush3.bf16.xpose.msra.mxu1 %v3278_v1  ;;  %2377 = vmatprep.mubr.f32.mxu0 %v1230_v59  ;;  %v2702_v1 = vpack.c.bf16 %v1201_v53, %v1200_v4  ;;  %v1156_v59 = vld [vmem:[%s3865_s2 + $0x60] sm:$0xff]  ;;  %v1175_v4 = vld [vmem:[%s3865_s2 + $0xf8] sm:$0xff]  ;;  %v1206_v53 = vld [vmem:[%s3865_s2 + $0x1f0] sm:$0xff] }
 0x15b   : > { %2619 = vmatprep.subr.bf16.mxu1 %v3292_v11  ;;  %2697 = vmatpush3.bf16.msra.mxu0 %v2696_v57  ;;  %v2714_v15 = vpack.c.bf16 %v1207_v30, %v1206_v53  ;;  %v2800_v53 = vld [vmem:[%s3104_s24 + $0x68] sm:$0xff] }
 0x15c   : > { %2699 = vmatprep.subr.bf16.mxu0 %v2698_v21  ;;  %v1157_v21 = vld [vmem:[%s3865_s2 + $0x68] sm:$0xff] }
 0x15d   : > { %2378 = vmatmul.mubr.f32.gmra.mrb[56].mxu0 %v1231_v58  ;;  %v2680_v58 = vpack.c.bf16 %v1157_v21, %v1156_v59 }
 0x15e   : > { %2380 = vmatprep.mubr.f32.mxu0 %v1232_v13  ;;  %v2682_v13 = vpack.c.bf16 %v1175_v4, %v1174_v26  ;;  %v2799_v26 = vld [vmem:[%s3104_s24 + $0x58] sm:$0xff] }
 0x15f   : > { %2701 = vmatpush3.bf16.msra.mxu0 %v2700_v3  ;;  %v1158_v3 = vld [vmem:[%s3865_s2 + $0x70] sm:$0xff] }
 0x160   : > { %2703 = vmatprep.subr.bf16.mxu0 %v2702_v1  ;;  %v1159_v1 = vld [vmem:[%s3865_s2 + $0x78] sm:$0xff] }
 0x161   : > { %2381 = vmatmul.mubr.f32.gmra.mrb[58].mxu0 %v1233_v61  ;;  %v2684_v28 = vpack.c.bf16 %v1159_v1, %v1158_v3  ;;  %v1208_v61 = vld [vmem:[%s3865_s2 + $0x200] sm:$0xff] }
 0x162   : > { %2621 = vmatpush3.bf16.xpose.msra.mxu1 %v3292_v11  ;;  %v2710_v11 = vpack.c.bf16 %v1205_v10, %v1204_v52  ;;  %v2790_v10 = vld [vmem:[%s3104_s24 + $0x10] sm:$0xff] }
 0x163   : > { %2655 = vmatprep.subr.bf16.mxu1 %v2654_v29  ;;  %2705 = vmatpush3.bf16.msra.mxu0 %v2704_v8  ;;  %v1209_v29 = vld [vmem:[%s3865_s2 + $0x208] sm:$0xff] }
 0x164   : > { %2707 = vmatprep.subr.bf16.mxu0 %v2706_v32  ;;  %v2718_v8 = vpack.c.bf16 %v1209_v29, %v1208_v61  ;;  %v2802_v61 = vld [vmem:[%s3104_s24 + $0x88] sm:$0xff] }
 0x167   : > { %2709 = vmatpush3.bf16.msra.mxu0 %v2708_v62 }
 0x168   : > { %2711 = vmatprep.subr.bf16.mxu0 %v2710_v11  ;;  %v2791_v11 = vld [vmem:[%s3104_s24 + $0x8] sm:$0xff] }
 0x169   : > { %2322 = vmatmul.mubr.f32.vlgmr.msra.gmra.mrb[40].mxu1 %v3356_v42  ;;  %v1167_v42 = vld [vmem:[%s3865_s2 + $0xb8] sm:$0xff] }
 0x16a   : > { %2324 = vmatprep.mubr.f32.mxu1 %v3373_v27  ;;  %2657 = vmatpush3.bf16.msra.mxu1 %v2656_v24  ;;  %v2664_v27 = vpack.c.bf16 %v1149_v5, %v1148_v63  ;;  %v2666_v19 = vpack.c.bf16 %v1167_v42, %v1166_v14  ;;  %v2793_v14 = vld [vmem:[%s3104_s24 + $0x28] sm:$0xff] }
 0x16b   : > { %2659 = vmatprep.subr.bf16.mxu1 %v2658_v17  ;;  %v2792_v17 = vld [vmem:[%s3104_s24 + $0x18] sm:$0xff] }
 0x16d   : > { %2325 = vmatmul.mubr.f32.gmra.mrb[42].mxu1 %v3369_v41  ;;  %v1169_v41 = vld [vmem:[%s3865_s2 + $0xc8] sm:$0xff] }
 0x16e   : > { %2327 = vmatprep.mubr.f32.mxu1 %v3390_v6  ;;  %2661 = vmatpush3.bf16.msra.mxu1 %v2660_v51  ;;  %v2668_v6 = vpack.c.bf16 %v1151_v35, %v1150_v20  ;;  %v2670_v37 = vpack.c.bf16 %v1169_v41, %v1168_v36  ;;  %v1212_v36 = vld [vmem:[%s3865_s2 + $0x220] sm:$0xff]  ;;  %v1213_v41 = vld [vmem:[%s3865_s2 + $0x228] sm:$0xff] }
 0x16f   : > { %2663 = vmatprep.subr.bf16.mxu1 %v2662_v56  ;;  %v2722_v56 = vpack.c.bf16 %v1211_v12, %v1210_v0 }
 0x171   : > { %2328 = vmatmul.mubr.f32.gmra.mrb[44].mxu1 %v3380_v2  ;;  %v1171_v2 = vld [vmem:[%s3865_s2 + $0xd8] sm:$0xff] }
 0x172   : > { %2330 = vmatprep.mubr.f32.mxu1 %v3404_v22  ;;  %2665 = vmatpush3.bf16.msra.mxu1 %v2664_v27  ;;  %v2672_v22 = vpack.c.bf16 %v1153_v48, %v1152_v44  ;;  %v2674_v45 = vpack.c.bf16 %v1171_v2, %v1170_v49  ;;  %v2794_v27 = vld [vmem:[%s3104_s24 + $0x38] sm:$0xff]  ;;  %v2796_v44 = vld [vmem:[%s3104_s24 + $0x40] sm:$0xff] }
 0x173   : > { %2667 = vmatprep.subr.bf16.mxu1 %v2666_v19 }
 0x175   : > { %2331 = vmatmul.mubr.f32.gmra.mrb[46].mxu1 %v3394_v9  ;;  %v1173_v9 = vld [vmem:[%s3865_s2 + $0xe8] sm:$0xff] }
 0x176   : > { %2333 = vmatprep.mubr.f32.mxu1 %v3420_v31  ;;  %2669 = vmatpush3.bf16.msra.mxu1 %v2668_v6  ;;  %v2676_v31 = vpack.c.bf16 %v1155_v46, %v1154_v54  ;;  %v2678_v57 = vpack.c.bf16 %v1173_v9, %v1172_v47  ;;  %v2795_v6 = vld [vmem:[%s3104_s24 + $0x30] sm:$0xff]  ;;  %v2726_v54 = vpack.c.bf16 %v1213_v41, %v1212_v36 }
 0x177   : > { %2671 = vmatprep.subr.bf16.mxu1 %v2670_v37  ;;  %v2797_v9 = vld [vmem:[%s3104_s24 + $0x50] sm:$0xff] }
 0x179   : > { %2334 = vmatmul.mubr.f32.gmra.mrb[48].mxu1 %v3410_v23  ;;  %v1189_v23 = vld [vmem:[%s3865_s2 + $0x168] sm:$0xff] }
 0x17a   : > { %2673 = vmatpush3.bf16.msra.mxu1 %v2672_v22  ;;  %v2712_v60 = vpack.c.bf16 %v1189_v23, %v1188_v55  ;;  %v2798_v55 = vld [vmem:[%s3104_s24 + $0x60] sm:$0xff]  ;;  %v1214_v23 = vld [vmem:[%s3865_s2 + $0x230] sm:$0xff] }
 0x17b   : > { %2675 = vmatprep.subr.bf16.mxu1 %v2674_v45 }
 0x17c   : > { %2713 = vmatpush3.bf16.msra.mxu0 %v2712_v60  ;;  %v1215_v60 = vld [vmem:[%s3865_s2 + $0x238] sm:$0xff] }
 0x17d   : > { %2715 = vmatprep.subr.bf16.mxu0 %v2714_v15  ;;  %v2730_v1 = vpack.c.bf16 %v1215_v60, %v1214_v23 }
 0x17e   : > { %2677 = vmatpush3.bf16.msra.mxu1 %v2676_v31 }
 0x17f   : > { %2679 = vmatprep.subr.bf16.mxu1 %v2678_v57 }
 0x180   : > { %2717 = vmatpush3.bf16.msra.mxu0 %v2716_v39  ;;  %v2801_v39 = vld [vmem:[%s3104_s24 + $0x78] sm:$0xff] }
 0x182   : > { %2681 = vmatpush3.bf16.msra.mxu1 %v2680_v58 }
 0x183   : > { %2683 = vmatprep.subr.bf16.mxu1 %v2682_v13 }
 0x186   : > { %2685 = vmatpush3.bf16.msra.mxu1 %v2684_v28 }
 0x187   : > { %2719 = vmatprep.subr.bf16.mxu1 %v2718_v8 }
 0x1fc   : > { %v745_v32 = vpop.f32.mrb[20].mxu1  ;;  %v870_v7 = vpop.f32.mrb[30].mxu0 }
 0x1fd   : > { %v1044_v52 = vsub.f32 %v2789_v50, %v745_v32  ;;  %v1046_v33 = vsub.f32 %v2790_v10, %v870_v7  ;;  %v747_v16 = vpop.f32.mrb[21].mxu1  ;;  %v872_v62 = vpop.f32.mrb[31].mxu0  ;;  %v1216_v7 = vld [vmem:[%s3865_s2 + $0x240] sm:$0xff]  ;;  %v1217_v50 = vld [vmem:[%s3865_s2 + $0x248] sm:$0xff] }
 0x1fe   : > { %v1045_v24 = vsub.f32 %v2791_v11, %v747_v16  ;;  %v1047_v25 = vsub.f32 %v2792_v17, %v872_v62 }
 0x1ff   : > { %v1094_v63 = vmul.f32 %v1044_v52, %v1044_v52  ;;  %v1096_v5 = vmul.f32 %v1046_v33, %v1046_v33  ;;  %v2803_v52 = vld [vmem:[%s3104_s24 + $0x80] sm:$0xff]  ;;  %v2804_v33 = vld [vmem:[%s3104_s24 + $0x90] sm:$0xff] }
 0x200   : > { %v1095_v38 = vmul.f32 %v1045_v24, %v1045_v24  ;;  %v1097_v43 = vmul.f32 %v1047_v25, %v1047_v25  ;;  %v751_v40 = vpop.f32.mrb[22].mxu1  ;;  %v876_v51 = vpop.f32.mrb[32].mxu0  ;;  %v2734_v24 = vpack.c.bf16 %v1217_v50, %v1216_v7 }
 0x201   : > { %v1049_v42 = vsub.f32 %v2793_v14, %v751_v40  ;;  %v1051_v19 = vsub.f32 %v2794_v27, %v876_v51  ;;  %v753_v20 = vpop.f32.mrb[23].mxu1  ;;  %v878_v35 = vpop.f32.mrb[33].mxu0  ;;  %v2806_v40 = vld [vmem:[%s3104_s24 + $0xb0] sm:$0xff]  ;;  %v1219_v14 = vld [vmem:[%s3865_s2 + $0x258] sm:$0xff] }
 0x202   : > { %v1050_v37 = vsub.f32 %v2795_v6, %v753_v20  ;;  %v1052_v48 = vsub.f32 %v2796_v44, %v878_v35  ;;  %1429 = vmatprep.mubr.f32.mxu1 %v1095_v38  ;;  %1544 = vmatprep.mubr.f32.mxu0 %v1097_v43  ;;  %v2805_v38 = vld [vmem:[%s3104_s24 + $0xa0] sm:$0xff] }
 0x203   : > { %1430 = vmatmul.mubr.f32.vlgmr.msra.gmra.mrb[50].mxu1 %v1094_v63  ;;  %1545 = vmatmul.mubr.f32.vlgmr.msra.gmra.mrb[60].mxu0 %v1096_v5  ;;  %v1099_v46 = vmul.f32 %v1049_v42, %v1049_v42  ;;  %v1101_v47 = vmul.f32 %v1051_v19, %v1051_v19  ;;  %v1218_v5 = vld [vmem:[%s3865_s2 + $0x250] sm:$0xff]  ;;  %v2807_v42 = vld [vmem:[%s3104_s24 + $0xa8] sm:$0xff]  ;;  %v2808_v19 = vld [vmem:[%s3104_s24 + $0xb8] sm:$0xff] }
 0x204   : > { %v1100_v49 = vmul.f32 %v1050_v37, %v1050_v37  ;;  %v1102_v2 = vmul.f32 %v1052_v48, %v1052_v48  ;;  %v757_v22 = vpop.f32.mrb[24].mxu1  ;;  %v882_v45 = vpop.f32.mrb[34].mxu0  ;;  %2721 = vmatpush3.bf16.msra.mxu1 %v2718_v8  ;;  %v2738_v37 = vpack.c.bf16 %v1219_v14, %v1218_v5 }
 0x205   : > { %v1054_v31 = vsub.f32 %v2797_v9, %v757_v22  ;;  %v1056_v57 = vsub.f32 %v2798_v55, %v882_v45  ;;  %v759_v59 = vpop.f32.mrb[25].mxu1  ;;  %v884_v21 = vpop.f32.mrb[35].mxu0  ;;  %2723 = vmatprep.subr.bf16.mxu1 %v2722_v56  ;;  %v2810_v22 = vld [vmem:[%s3104_s24 + $0xd8] sm:$0xff]  ;;  %v1221_v9 = vld [vmem:[%s3865_s2 + $0x268] sm:$0xff] }
 0x206   : > { %v1055_v4 = vsub.f32 %v2799_v26, %v759_v59  ;;  %v1057_v58 = vsub.f32 %v2800_v53, %v884_v21  ;;  %1434 = vmatprep.mubr.f32.mxu1 %v1100_v49  ;;  %1549 = vmatprep.mubr.f32.mxu0 %v1102_v2  ;;  %v2809_v49 = vld [vmem:[%s3104_s24 + $0xc8] sm:$0xff] }
 0x207   : > { %1435 = vmatmul.mubr.f32.gmra.mrb[52].mxu1 %v1099_v46  ;;  %1550 = vmatmul.mubr.f32.gmra.mrb[62].mxu0 %v1101_v47  ;;  %v1104_v18 = vmul.f32 %v1054_v31, %v1054_v31  ;;  %v1106_v34 = vmul.f32 %v1056_v57, %v1056_v57  ;;  %v1220_v47 = vld [vmem:[%s3865_s2 + $0x260] sm:$0xff]  ;;  %v2811_v31 = vld [vmem:[%s3104_s24 + $0xd0] sm:$0xff] }
 0x208   : > { %v1105_v30 = vmul.f32 %v1055_v4, %v1055_v4  ;;  %v1107_v3 = vmul.f32 %v1057_v58, %v1057_v58  ;;  %v763_v13 = vpop.f32.mrb[26].mxu1  ;;  %v888_v15 = vpop.f32.mrb[36].mxu0  ;;  %2725 = vmatpush3.bf16.msra.mxu1 %v2722_v56  ;;  %v2812_v57 = vld [vmem:[%s3104_s24 + $0xe0] sm:$0xff]  ;;  %v2742_v4 = vpack.c.bf16 %v1221_v9, %v1220_v47  ;;  %v2825_v47 = vld [vmem:[%s3104_s24 + $0x168] sm:$0xff] }
 0x209   : > { %v1059_v28 = vsub.f32 %v2801_v39, %v763_v13  ;;  %v1061_v29 = vsub.f32 %v2802_v61, %v888_v15  ;;  %v765_v8 = vpop.f32.mrb[27].mxu1  ;;  %v890_v32 = vpop.f32.mrb[37].mxu0  ;;  %2727 = vmatprep.subr.bf16.mxu1 %v2726_v54  ;;  %v2814_v13 = vld [vmem:[%s3104_s24 + $0x100] sm:$0xff]  ;;  %v1223_v39 = vld [vmem:[%s3865_s2 + $0x278] sm:$0xff] }
 0x20a   : > { %v1060_v10 = vsub.f32 %v2803_v52, %v765_v8  ;;  %v1062_v16 = vsub.f32 %v2804_v33, %v890_v32  ;;  %1439 = vmatprep.mubr.f32.mxu1 %v1105_v30  ;;  %1554 = vmatprep.mubr.f32.mxu0 %v1107_v3  ;;  %v2813_v30 = vld [vmem:[%s3104_s24 + $0xf0] sm:$0xff] }
 0x20b   : > { %1440 = vmatmul.mubr.f32.gmra.mrb[54].mxu1 %v1104_v18  ;;  %1555 = vmatmul.mubr.f32.gmra.mrb[64].mxu0 %v1106_v34  ;;  %v1109_v17 = vmul.f32 %v1059_v28, %v1059_v28  ;;  %v1111_v25 = vmul.f32 %v1061_v29, %v1061_v29  ;;  %v1222_v34 = vld [vmem:[%s3865_s2 + $0x270] sm:$0xff]  ;;  %v2815_v28 = vld [vmem:[%s3104_s24 + $0xf8] sm:$0xff]  ;;  %v2816_v29 = vld [vmem:[%s3104_s24 + $0x108] sm:$0xff] }
 0x20c   : > { %v1110_v62 = vmul.f32 %v1060_v10, %v1060_v10  ;;  %v1112_v0 = vmul.f32 %v1062_v16, %v1062_v16  ;;  %v769_v12 = vpop.f32.mrb[28].mxu1  ;;  %v894_v11 = vpop.f32.mrb[38].mxu0  ;;  %2729 = vmatpush3.bf16.msra.mxu1 %v2726_v54  ;;  %v2746_v10 = vpack.c.bf16 %v1223_v39, %v1222_v34 }
 0x20d   : > { %v1064_v43 = vsub.f32 %v2805_v38, %v769_v12  ;;  %v1066_v51 = vsub.f32 %v2806_v40, %v894_v11  ;;  %v771_v56 = vpop.f32.mrb[29].mxu1  ;;  %v896_v63 = vpop.f32.mrb[39].mxu0  ;;  %2731 = vmatprep.subr.bf16.mxu1 %v2730_v1  ;;  %v2818_v12 = vld [vmem:[%s3104_s24 + $0x128] sm:$0xff] }
 0x20e   : > { %v1065_v27 = vsub.f32 %v2807_v42, %v771_v56  ;;  %v1067_v20 = vsub.f32 %v2808_v19, %v896_v63  ;;  %1444 = vmatprep.mubr.f32.mxu1 %v1110_v62  ;;  %1559 = vmatprep.mubr.f32.mxu0 %v1112_v0  ;;  %v2817_v62 = vld [vmem:[%s3104_s24 + $0x118] sm:$0xff] }
 0x20f   : > { %1445 = vmatmul.mubr.f32.gmra.mrb[56].mxu1 %v1109_v17  ;;  %1560 = vmatmul.mubr.f32.gmra.mrb[66].mxu0 %v1111_v25  ;;  %v1114_v44 = vmul.f32 %v1064_v43, %v1064_v43  ;;  %v1116_v48 = vmul.f32 %v1066_v51, %v1066_v51  ;;  %v2819_v25 = vld [vmem:[%s3104_s24 + $0x120] sm:$0xff]  ;;  %v2820_v43 = vld [vmem:[%s3104_s24 + $0x130] sm:$0xff] }
 0x210   : > { %v1115_v35 = vmul.f32 %v1065_v27, %v1065_v27  ;;  %v1117_v36 = vmul.f32 %v1067_v20, %v1067_v20  ;;  %v775_v41 = vpop.f32.mrb[30].mxu1  ;;  %v900_v6 = vpop.f32.mrb[40].mxu0  ;;  %2733 = vmatpush3.bf16.msra.mxu1 %v2730_v1  ;;  %v2821_v27 = vld [vmem:[%s3104_s24 + $0x140] sm:$0xff]  ;;  %v2822_v20 = vld [vmem:[%s3104_s24 + $0x150] sm:$0xff] }
 0x211   : > { %v1069_v2 = vsub.f32 %v2809_v49, %v775_v41  ;;  %v1071_v45 = vsub.f32 %v2810_v22, %v900_v6  ;;  %v777_v54 = vpop.f32.mrb[31].mxu1  ;;  %v902_v46 = vpop.f32.mrb[41].mxu0  ;;  %2735 = vmatprep.subr.bf16.mxu1 %v2734_v24  ;;  %v2823_v6 = vld [vmem:[%s3104_s24 + $0x148] sm:$0xff] }
 0x212   : > { %v1070_v55 = vsub.f32 %v2811_v31, %v777_v54  ;;  %v1072_v59 = vsub.f32 %v2812_v57, %v902_v46  ;;  %1449 = vmatprep.mubr.f32.mxu1 %v1115_v35  ;;  %1564 = vmatprep.mubr.f32.mxu0 %v1117_v36  ;;  %v2826_v31 = vld [vmem:[%s3104_s24 + $0x178] sm:$0xff] }
 0x213   : > { %1450 = vmatmul.mubr.f32.gmra.mrb[58].mxu1 %v1114_v44  ;;  %1565 = vmatmul.mubr.f32.gmra.mrb[68].mxu0 %v1116_v48  ;;  %v1119_v53 = vmul.f32 %v1069_v2, %v1069_v2  ;;  %v1121_v58 = vmul.f32 %v1071_v45, %v1071_v45  ;;  %v2824_v44 = vld [vmem:[%s3104_s24 + $0x158] sm:$0xff] }
 0x214   : > { %v1120_v21 = vmul.f32 %v1070_v55, %v1070_v55  ;;  %v1122_v23 = vmul.f32 %v1072_v59, %v1072_v59  ;;  %v781_v60 = vpop.f32.mrb[32].mxu1  ;;  %v906_v26 = vpop.f32.mrb[42].mxu0  ;;  %2737 = vmatpush3.bf16.msra.mxu1 %v2734_v24 }
 0x215   : > { %v1074_v3 = vsub.f32 %v2813_v30, %v781_v60  ;;  %v1076_v15 = vsub.f32 %v2814_v13, %v906_v26  ;;  %v783_v1 = vpop.f32.mrb[33].mxu1  ;;  %v908_v18 = vpop.f32.mrb[43].mxu0  ;;  %2739 = vmatprep.subr.bf16.mxu1 %v2738_v37  ;;  %v2828_v60 = vld [vmem:[%s3104_s24 + $0x180] sm:$0xff] }
 0x216   : > { %v1075_v61 = vsub.f32 %v2815_v28, %v783_v1  ;;  %v1077_v8 = vsub.f32 %v2816_v29, %v908_v18  ;;  %1454 = vmatprep.mubr.f32.mxu1 %v1120_v21  ;;  %1569 = vmatprep.mubr.f32.mxu0 %v1122_v23  ;;  %v2827_v21 = vld [vmem:[%s3104_s24 + $0x170] sm:$0xff] }
 0x217   : > { %1455 = vmatmul.mubr.f32.gmra.mrb[60].mxu1 %v1119_v53  ;;  %1570 = vmatmul.mubr.f32.gmra.mrb[70].mxu0 %v1121_v58  ;;  %v1124_v33 = vmul.f32 %v1074_v3, %v1074_v3  ;;  %v1126_v16 = vmul.f32 %v1076_v15, %v1076_v15 }
 0x218   : > { %v1125_v32 = vmul.f32 %v1075_v61, %v1075_v61  ;;  %v1127_v7 = vmul.f32 %v1077_v8, %v1077_v8  ;;  %v787_v50 = vpop.f32.mrb[34].mxu1  ;;  %v912_v52 = vpop.f32.mrb[44].mxu0  ;;  %2741 = vmatpush3.bf16.msra.mxu1 %v2738_v37 }
 0x219   : > { %v1079_v0 = vsub.f32 %v2817_v62, %v787_v50  ;;  %v1081_v11 = vsub.f32 %v2818_v12, %v912_v52  ;;  %v789_v24 = vpop.f32.mrb[35].mxu1  ;;  %v914_v17 = vpop.f32.mrb[45].mxu0  ;;  %2743 = vmatprep.subr.bf16.mxu1 %v2742_v4  ;;  %v2830_v52 = vld [vmem:[%s3104_s24 + $0x20] sm:$0xff] }
 0x21a   : > { %v1080_v38 = vsub.f32 %v2819_v25, %v789_v24  ;;  %v1082_v40 = vsub.f32 %v2820_v43, %v914_v17  ;;  %1459 = vmatprep.mubr.f32.mxu1 %v1125_v32  ;;  %1574 = vmatprep.mubr.f32.mxu0 %v1127_v7  ;;  %v2829_v32 = vld [vmem:[%s3104_s24 + $0x48] sm:$0xff]  ;;  %v2832_v24 = vld [vmem:[%s3104_s24 + $0x70] sm:$0xff] }
 0x21b   : > { %1460 = vmatmul.mubr.f32.gmra.mrb[62].mxu1 %v1124_v33  ;;  %1575 = vmatmul.mubr.f32.gmra.mrb[72].mxu0 %v1126_v16  ;;  %v1129_v14 = vmul.f32 %v1079_v0, %v1079_v0  ;;  %v1131_v42 = vmul.f32 %v1081_v11, %v1081_v11  ;;  %v2831_v0 = vld [vmem:[%s3104_s24 + $0x98] sm:$0xff] }
 0x21c   : > { %v1130_v51 = vmul.f32 %v1080_v38, %v1080_v38  ;;  %v1132_v56 = vmul.f32 %v1082_v40, %v1082_v40  ;;  %v793_v63 = vpop.f32.mrb[36].mxu1  ;;  %v918_v5 = vpop.f32.mrb[46].mxu0  ;;  %2745 = vmatpush3.bf16.msra.mxu1 %v2742_v4  ;;  %v2833_v40 = vld [vmem:[%s3104_s24 + $0xe8] sm:$0xff] }
 0x21d   : > { %v1084_v19 = vsub.f32 %v2821_v27, %v793_v63  ;;  %v1086_v35 = vsub.f32 %v2822_v20, %v918_v5  ;;  %v795_v36 = vpop.f32.mrb[37].mxu1  ;;  %v920_v41 = vpop.f32.mrb[47].mxu0  ;;  %2747 = vmatprep.subr.bf16.mxu1 %v2746_v10  ;;  %v2834_v63 = vld [vmem:[%s3104_s24 + $0xc0] sm:$0xff] }
 0x21e   : > { %v1085_v37 = vsub.f32 %v2823_v6, %v795_v36  ;;  %v1087_v48 = vsub.f32 %v2824_v44, %v920_v41  ;;  %1464 = vmatprep.mubr.f32.mxu1 %v1130_v51  ;;  %1579 = vmatprep.mubr.f32.mxu0 %v1132_v56  ;;  %v2836_v36 = vld [vmem:[%s3104_s24 + $0x110] sm:$0xff] }
 0x21f   : > { %1465 = vmatmul.mubr.f32.gmra.mrb[64].mxu1 %v1129_v14  ;;  %1580 = vmatmul.mubr.f32.gmra.mrb[74].mxu0 %v1131_v42  ;;  %v1134_v54 = vmul.f32 %v1084_v19, %v1084_v19  ;;  %v1136_v46 = vmul.f32 %v1086_v35, %v1086_v35  ;;  %v2835_v19 = vld [vmem:[%s3104_s24 + $0x138] sm:$0xff] }
 0x220   : > { %v1135_v49 = vmul.f32 %v1085_v37, %v1085_v37  ;;  %v1137_v2 = vmul.f32 %v1087_v48, %v1087_v48  ;;  %v799_v22 = vpop.f32.mrb[38].mxu1  ;;  %v924_v45 = vpop.f32.mrb[48].mxu0  ;;  %2749 = vmatpush3.bf16.msra.mxu1 %v2746_v10  ;;  %v2837_v48 = vld [vmem:[%s3104_s24 + $0x188] sm:$0xff] }
 0x221   : > { %v1089_v9 = vsub.f32 %v2825_v47, %v799_v22  ;;  %v1091_v55 = vsub.f32 %v2826_v31, %v924_v45  ;;  %v801_v57 = vpop.f32.mrb[39].mxu1  ;;  %v926_v59 = vpop.f32.mrb[49].mxu0  ;;  %v2838_v22 = vld [vmem:[%s3104_s24 + $0x160] sm:$0xff]  ;;  %s1783_s24 = sshll.u32 %s3869_s9, 3 }
 0x222   : > { %v1090_v23 = vsub.f32 %v2827_v21, %v801_v57  ;;  %v1092_v26 = vsub.f32 %v2828_v60, %v926_v59  ;;  %1469 = vmatprep.mubr.f32.mxu1 %v1135_v49  ;;  %1584 = vmatprep.mubr.f32.mxu0 %v1137_v2  ;;  %s3835_s26 = scalar_lea.vmem %s3867_s4, %s1783_s24 }
 0x223   : > { %1470 = vmatmul.mubr.f32.gmra.mrb[66].mxu1 %v1134_v54  ;;  %1585 = vmatmul.mubr.f32.gmra.mrb[76].mxu0 %v1136_v46  ;;  %v1139_v30 = vmul.f32 %v1089_v9, %v1089_v9  ;;  %v1141_v3 = vmul.f32 %v1091_v55, %v1091_v55 }
 0x224   : > { %v1140_v4 = vmul.f32 %v1090_v23, %v1090_v23  ;;  %v1142_v53 = vmul.f32 %v1092_v26, %v1092_v26  ;;  %v3785_v58 = vpop.f32.mrb[50].mxu0 }
 0x225   : > { %v3787_v13 = vpop.f32.mrb[51].mxu0 }
 0x226   : > { %1474 = vmatprep.mubr.f32.mxu1 %v1140_v4  ;;  %1589 = vmatprep.mubr.f32.mxu0 %v1142_v53 }
 0x227   : > { %1475 = vmatmul.mubr.f32.gmra.mrb[68].mxu1 %v1139_v30  ;;  %1590 = vmatmul.mubr.f32.gmra.mrb[78].mxu0 %v1141_v3 }
 0x228   : > { %v3789_v15 = vpop.f32.mrb[52].mxu0 }
 0x229   : > { %v3791_v1 = vpop.f32.mrb[53].mxu0 }
 0x22c   : > { %v3793_v18 = vpop.f32.mrb[54].mxu0 }
 0x22d   : > { %v3795_v34 = vpop.f32.mrb[55].mxu0 }
 0x230   : > { %v3797_v39 = vpop.f32.mrb[56].mxu0 }
 0x231   : > { %v3799_v28 = vpop.f32.mrb[57].mxu0 }
 0x234   : > { %v3801_v61 = vpop.f32.mrb[58].mxu0 }
 0x235   : > { %v3803_v29 = vpop.f32.mrb[59].mxu0 }
 0x23c   : > { %v2323_v8 = vpop.f32.mrb[40].mxu1 }
 0x23d   : > { %v1053_v7 = vsub.f32 %v2829_v32, %v2323_v8  ;;  %v995_v50 = vpop.f32.mrb[41].mxu1 }
 0x23e   : > { %v1048_v10 = vsub.f32 %v2830_v52, %v995_v50 }
 0x23f   : > { %v1103_v62 = vmul.f32 %v1053_v7, %v1053_v7 }
 0x240   : > { %v1098_v33 = vmul.f32 %v1048_v10, %v1048_v10  ;;  %v2326_v16 = vpop.f32.mrb[42].mxu1 }
 0x241   : > { %v1063_v12 = vsub.f32 %v2831_v0, %v2326_v16  ;;  %v1005_v11 = vpop.f32.mrb[43].mxu1 }
 0x242   : > { %v1058_v17 = vsub.f32 %v2832_v24, %v1005_v11  ;;  %2415 = vmatprep.mubr.f32.mxu1 %v1098_v33 }
 0x243   : > { %2416 = vmatmul.mubr.f32.vlgmr.msra.gmra.mrb[70].mxu1 %v1103_v62  ;;  %v1113_v43 = vmul.f32 %v1063_v12, %v1063_v12 }
 0x244   : > { %v1108_v25 = vmul.f32 %v1058_v17, %v1058_v17  ;;  %v2329_v38 = vpop.f32.mrb[44].mxu1 }
 0x245   : > { %v1073_v51 = vsub.f32 %v2833_v40, %v2329_v38  ;;  %v1015_v56 = vpop.f32.mrb[45].mxu1 }
 0x246   : > { %v1068_v5 = vsub.f32 %v2834_v63, %v1015_v56  ;;  %2418 = vmatprep.mubr.f32.mxu1 %v1108_v25 }
 0x247   : > { %2419 = vmatmul.mubr.f32.gmra.mrb[72].mxu1 %v1113_v43  ;;  %v1123_v27 = vmul.f32 %v1073_v51, %v1073_v51 }
 0x248   : > { %v1118_v14 = vmul.f32 %v1068_v5, %v1068_v5  ;;  %v2332_v42 = vpop.f32.mrb[46].mxu1 }
 0x249   : > { %v1083_v20 = vsub.f32 %v2835_v19, %v2332_v42  ;;  %v1025_v35 = vpop.f32.mrb[47].mxu1 }
 0x24a   : > { %v1078_v41 = vsub.f32 %v2836_v36, %v1025_v35  ;;  %2421 = vmatprep.mubr.f32.mxu1 %v1118_v14 }
 0x24b   : > { %2422 = vmatmul.mubr.f32.gmra.mrb[74].mxu1 %v1123_v27  ;;  %v1133_v44 = vmul.f32 %v1083_v20, %v1083_v20 }
 0x24c   : > { %v1128_v6 = vmul.f32 %v1078_v41, %v1078_v41  ;;  %v2335_v37 = vpop.f32.mrb[48].mxu1 }
 0x24d   : > { %v1093_v49 = vsub.f32 %v2837_v48, %v2335_v37  ;;  %v1035_v2 = vpop.f32.mrb[49].mxu1 }
 0x24e   : > { %v1088_v45 = vsub.f32 %v2838_v22, %v1035_v2  ;;  %2424 = vmatprep.mubr.f32.mxu1 %v1128_v6 }
 0x24f   : > { %2425 = vmatmul.mubr.f32.gmra.mrb[76].mxu1 %v1133_v44  ;;  %v1143_v46 = vmul.f32 %v1093_v49, %v1093_v49 }
 0x250   : > { %v1138_v54 = vmul.f32 %v1088_v45, %v1088_v45 }
 0x252   : > { %2427 = vmatprep.mubr.f32.mxu1 %v1138_v54 }
 0x253   : > { %2428 = vmatmul.mubr.f32.gmra.mrb[78].mxu1 %v1143_v46 }
 0x2d6   : > { %v2124_v47 = vpop.f32.mrb[50].mxu1  ;;  %v2186_v9 = vpop.f32.mrb[60].mxu0 }
 0x2d7   : > { %v2125_v31 = vpop.f32.mrb[51].mxu1  ;;  %v2187_v55 = vpop.f32.mrb[61].mxu0 }
 0x2d8   : > { %v2126_v57 = vadd.f32 %v2125_v31, %v2124_v47  ;;  %v2188_v59 = vadd.f32 %v2187_v55, %v2186_v9 }
 0x2da   : > { %v1432_v21 = vadd.f32 %v2126_v57, %v3787_v13  ;;  %v2127_v23 = vpop.f32.mrb[52].mxu1  ;;  %v2189_v60 = vpop.f32.mrb[62].mxu0 }
 0x2db   : > { %v2128_v26 = vpop.f32.mrb[53].mxu1  ;;  %v2190_v4 = vpop.f32.mrb[63].mxu0 }
 0x2dc   : > { %v2129_v53 = vadd.f32 %v2128_v26, %v2127_v23  ;;  %v2191_v30 = vadd.f32 %v2190_v4, %v2189_v60  ;;  %v3816_v3 = vadd.f32 %v2188_v59, %v1432_v21 }
 0x2de   : > { %v1437_v8 = vadd.f32 %v3785_v58, %v2129_v53  ;;  %v2130_v32 = vpop.f32.mrb[54].mxu1  ;;  %v2192_v7 = vpop.f32.mrb[64].mxu0 }
 0x2df   : > { %v2131_v50 = vpop.f32.mrb[55].mxu1  ;;  %v2193_v52 = vpop.f32.mrb[65].mxu0 }
 0x2e0   : > { %v2132_v10 = vadd.f32 %v2131_v50, %v2130_v32  ;;  %v2194_v33 = vadd.f32 %v2193_v52, %v2192_v7  ;;  %v3819_v16 = vadd.f32 %v2191_v30, %v1437_v8 }
 0x2e2   : > { %v1442_v13 = vadd.f32 %v2132_v10, %v3791_v1  ;;  %v2133_v62 = vpop.f32.mrb[56].mxu1  ;;  %v2195_v0 = vpop.f32.mrb[66].mxu0 }
 0x2e3   : > { %v2134_v12 = vpop.f32.mrb[57].mxu1  ;;  %v2196_v11 = vpop.f32.mrb[67].mxu0 }
 0x2e4   : > { %v2135_v24 = vadd.f32 %v2134_v12, %v2133_v62  ;;  %v2197_v17 = vadd.f32 %v2196_v11, %v2195_v0  ;;  %v3822_v25 = vadd.f32 %v2194_v33, %v1442_v13 }
 0x2e6   : > { %v1447_v58 = vadd.f32 %v3789_v15, %v2135_v24  ;;  %v2136_v38 = vpop.f32.mrb[58].mxu1  ;;  %v2198_v43 = vpop.f32.mrb[68].mxu0 }
 0x2e7   : > { %v2137_v40 = vpop.f32.mrb[59].mxu1  ;;  %v2199_v51 = vpop.f32.mrb[69].mxu0 }
 0x2e8   : > { %v2138_v56 = vadd.f32 %v2137_v40, %v2136_v38  ;;  %v2200_v63 = vadd.f32 %v2199_v51, %v2198_v43  ;;  %v1562_v5 = vadd.f32 %v2197_v17, %v1447_v58 }
 0x2ea   : > { %v1452_v14 = vadd.f32 %v2138_v56, %v3795_v34  ;;  %v2139_v1 = vpop.f32.mrb[60].mxu1  ;;  %v2201_v42 = vpop.f32.mrb[70].mxu0 }
 0x2eb   : > { %v2140_v27 = vpop.f32.mrb[61].mxu1  ;;  %v2202_v19 = vpop.f32.mrb[71].mxu0 }
 0x2ec   : > { %v2141_v20 = vadd.f32 %v2140_v27, %v2139_v1  ;;  %v2203_v35 = vadd.f32 %v2202_v19, %v2201_v42  ;;  %v1567_v36 = vadd.f32 %v2200_v63, %v1452_v14 }
 0x2ee   : > { %v1457_v41 = vadd.f32 %v3793_v18, %v2141_v20  ;;  %v2142_v6 = vpop.f32.mrb[62].mxu1  ;;  %v2204_v15 = vpop.f32.mrb[72].mxu0 }
 0x2ef   : > { %v2143_v37 = vpop.f32.mrb[63].mxu1  ;;  %v2205_v44 = vpop.f32.mrb[73].mxu0 }
 0x2f0   : > { %v2144_v48 = vadd.f32 %v2143_v37, %v2142_v6  ;;  %v2206_v49 = vadd.f32 %v2205_v44, %v2204_v15  ;;  %v1572_v2 = vadd.f32 %v2203_v35, %v1457_v41 }
 0x2f2   : > { %v1462_v22 = vadd.f32 %v2144_v48, %v3799_v28  ;;  %v2145_v45 = vpop.f32.mrb[64].mxu1  ;;  %v2207_v34 = vpop.f32.mrb[74].mxu0 }
 0x2f3   : > { %v2146_v54 = vpop.f32.mrb[65].mxu1  ;;  %v2208_v46 = vpop.f32.mrb[75].mxu0 }
 0x2f4   : > { %v2147_v47 = vadd.f32 %v2146_v54, %v2145_v45  ;;  %v2209_v9 = vadd.f32 %v2208_v46, %v2207_v34  ;;  %v1577_v31 = vadd.f32 %v2206_v49, %v1462_v22 }
 0x2f6   : > { %v1467_v55 = vadd.f32 %v3797_v39, %v2147_v47  ;;  %v2148_v57 = vpop.f32.mrb[66].mxu1  ;;  %v2210_v18 = vpop.f32.mrb[76].mxu0 }
 0x2f7   : > { %v2149_v59 = vpop.f32.mrb[67].mxu1  ;;  %v2211_v21 = vpop.f32.mrb[77].mxu0 }
 0x2f8   : > { %v2150_v23 = vadd.f32 %v2149_v59, %v2148_v57  ;;  %v2212_v60 = vadd.f32 %v2211_v21, %v2210_v18  ;;  %v1582_v26 = vadd.f32 %v2209_v9, %v1467_v55 }
 0x2fa   : > { %v1472_v4 = vadd.f32 %v2150_v23, %v3803_v29  ;;  %v2151_v28 = vpop.f32.mrb[68].mxu1  ;;  %v2213_v53 = vpop.f32.mrb[78].mxu0 }
 0x2fb   : > { %v2152_v30 = vpop.f32.mrb[69].mxu1  ;;  %v2214_v8 = vpop.f32.mrb[79].mxu0 }
 0x2fc   : > { %v2153_v32 = vadd.f32 %v2152_v30, %v2151_v28  ;;  %v2215_v7 = vadd.f32 %v2214_v8, %v2213_v53  ;;  %v1587_v50 = vadd.f32 %v2212_v60, %v1472_v4 }
 0x2fe   : > { %v1477_v52 = vadd.f32 %v3801_v61, %v2153_v32 }
 0x300   : > { %v1592_v39 = vadd.f32 %v2215_v7, %v1477_v52 }
 0x316   : > { %v2417_v29 = vpop.f32.mrb[70].mxu1 }
 0x317   : > { %v1667_v10 = vadd.f32 %v2417_v29, %v3819_v16  ;;  %v1661_v33 = vpop.f32.mrb[71].mxu1 }
 0x318   : > { %v1662_v61 = vadd.f32 %v1661_v33, %v3816_v3 }
 0x319   : > { %1712 = vst.msk [vmem:[%s3835_s26 + $0x8] sm:$0xff] %vm1710_vm0, %v1667_v10 }
 0x31a   : > { %1711 = vst.msk [vmem:[%s3835_s26] sm:$0xff] %vm1710_vm0, %v1662_v61  ;;  %v2420_v13 = vpop.f32.mrb[72].mxu1 }
 0x31b   : > { %v1677_v62 = vadd.f32 %v2420_v13, %v1562_v5  ;;  %v1671_v0 = vpop.f32.mrb[73].mxu1 }
 0x31c   : > { %v1672_v12 = vadd.f32 %v1671_v0, %v3822_v25 }
 0x31d   : > { %1714 = vst.msk [vmem:[%s3835_s26 + $0x18] sm:$0xff] %vm1710_vm0, %v1677_v62 }
 0x31e   : > { %1713 = vst.msk [vmem:[%s3835_s26 + $0x10] sm:$0xff] %vm1710_vm0, %v1672_v12  ;;  %v2423_v16 = vpop.f32.mrb[74].mxu1 }
 0x31f   : > { %v1687_v11 = vadd.f32 %v2423_v16, %v1572_v2  ;;  %v1681_v3 = vpop.f32.mrb[75].mxu1 }
 0x320   : > { %v1682_v24 = vadd.f32 %v1681_v3, %v1567_v36 }
 0x321   : > { %1716 = vst.msk [vmem:[%s3835_s26 + $0x28] sm:$0xff] %vm1710_vm0, %v1687_v11 }
 0x322   : > { %1715 = vst.msk [vmem:[%s3835_s26 + $0x20] sm:$0xff] %vm1710_vm0, %v1682_v24  ;;  %v2426_v17 = vpop.f32.mrb[76].mxu1 }
 0x323   : > { %v1697_v58 = vadd.f32 %v2426_v17, %v1582_v26  ;;  %v1691_v38 = vpop.f32.mrb[77].mxu1 }
 0x324   : > { %v1692_v43 = vadd.f32 %v1691_v38, %v1577_v31 }
 0x325   : > { %1718 = vst.msk [vmem:[%s3835_s26 + $0x38] sm:$0xff] %vm1710_vm0, %v1697_v58 }
 0x326   : > { %1717 = vst.msk [vmem:[%s3835_s26 + $0x30] sm:$0xff] %vm1710_vm0, %v1692_v43  ;;  %v2429_v25 = vpop.f32.mrb[78].mxu1 }
 0x327   : > { %v1707_v40 = vadd.f32 %v2429_v25, %v1592_v39  ;;  %v1701_v51 = vpop.f32.mrb[79].mxu1 }
 0x328   : > { %v1702_v56 = vadd.f32 %v1701_v51, %v1587_v50 }
 0x329   : > { %1720 = vst.msk [vmem:[%s3835_s26 + $0x48] sm:$0xff] %vm1710_vm0, %v1707_v40 }
 0x32a   : > { %1719 = vst.msk [vmem:[%s3835_s26 + $0x40] sm:$0xff] %vm1710_vm0, %v1702_v56 }
 0x32b PF: > { %s14_s15 = sadd.s32 1, %s2845_s15  }
 0x32c   : > { %p11_p4 = scmp.ge.s32.totalorder %s14_s15, 4  }
 0x32e   :  { %13 = sbr.rel (!%p11_p4) target bundleno = 1 (0x1), region = 66 }

</bundles_post_ra>
